<compile_context>
chip_gen: v5e
topology: v5e:2x2
jax: 0.10.0
libtpu: 0.0.40
codegen_flags: <defaults>
</compile_context>

<pallas_src>
import functools
import math

import jax
import jax.numpy as jnp
from jax import lax
from jax.experimental import pallas as pl
from jax.experimental.pallas import tpu as pltpu


def _vmem_capacity_bytes():
    """Physical VMEM per TensorCore (64 MiB on v7x, 128 MiB on v5e/v6e)."""
    try:
        return int(pltpu.get_tpu_info().vmem_capacity_bytes)
    except Exception:
        return 64 * 1024 * 1024  # conservative (v7x) fallback


_VMEM_CAP = _vmem_capacity_bytes()
# Scoped-VMEM limit handed to Mosaic; leave headroom for compiler-internal scratch.
_VMEM_LIMIT = min(int(0.75 * _VMEM_CAP), 96 * 1024 * 1024)


def _pick_tile(dim, pref, align):
    """Largest divisor of `dim` <= pref, preferring multiples of `align`.

    Falls back to the largest (unaligned, >= 8) divisor <= pref; only returns the full
    dimension when no usable divisor exists (avoids silently huge blocks / VMEM OOM).
    """
    if dim <= pref:
        return dim
    t = (pref // align) * align
    while t >= align:
        if dim % t == 0:
            return t
        t -= align
    for t in range(pref, 7, -1):  # relax alignment, keep >= 8
        if dim % t == 0:
            return t
    # TODO(synk): switch to a pl.cdiv grid with a masked tail tile for prime-ish dims.
    return dim


# ----------------------------------------------------------------------------
# Kernel 1: tiled dense layer   y = x @ Wt + b
#   x, Wt already bf16 (no in-kernel casts); f32 accumulator; pl.when init/finalize.
# ----------------------------------------------------------------------------
def _linear_kernel(x_ref, wt_ref, b_ref, o_ref, acc_ref):
    k = pl.program_id(2)

    @pl.when(k == 0)
    def _():
        acc_ref[...] = jnp.zeros_like(acc_ref)

    acc_ref[...] += jnp.dot(x_ref[...], wt_ref[...],
                            preferred_element_type=jnp.float32)

    @pl.when(k == pl.num_programs(2) - 1)
    def _():
        o_ref[...] = (acc_ref[...] + b_ref[...]).astype(o_ref.dtype)


def linear(x, wt, b, *, out_dtype, tm_pref=512, tn_pref=512, tk_pref=512):
    """x: (M, K) bf16; wt: (K, N) bf16 (pre-transposed at prep time); b: (N,) f32."""
    m, k_dim = x.shape
    n = wt.shape[1]
    b2 = b.reshape(1, n)

    tm = _pick_tile(m, tm_pref, 8)
    tn = _pick_tile(n, tn_pref, 256)   # 256-wide MXU on v6e/v7x; 128-multiples also fine
    tk = _pick_tile(k_dim, tk_pref, 128)
    grid = (m // tm, n // tn, k_dim // tk)

    cost = pl.CostEstimate(
        flops=2 * m * k_dim * n,
        transcendentals=0,
        bytes_accessed=(x.size * x.dtype.itemsize + wt.size * wt.dtype.itemsize
                        + b2.size * 4 + m * n * jnp.dtype(out_dtype).itemsize))

    return pl.pallas_call(
        _linear_kernel,
        out_shape=jax.ShapeDtypeStruct((m, n), out_dtype),
        grid=grid,
        in_specs=[
            pl.BlockSpec((tm, tk), lambda i, j, kk: (i, kk)),
            pl.BlockSpec((tk, tn), lambda i, j, kk: (kk, j)),
            pl.BlockSpec((1, tn), lambda i, j, kk: (0, j)),
        ],
        out_specs=pl.BlockSpec((tm, tn), lambda i, j, kk: (i, j)),
        scratch_shapes=[pltpu.VMEM((tm, tn), jnp.float32)],
        compiler_params=pltpu.CompilerParams(
            dimension_semantics=("parallel", "parallel", "arbitrary"),
            vmem_limit_bytes=_VMEM_LIMIT),
        cost_estimate=cost,
    )(x, wt, b2)


# ----------------------------------------------------------------------------
# Kernel 2: multi-head attention, grid = (B, S // tq), all heads per instance.
#   Reads the (B, S, 3, H, hd) fused-QKV view directly (no XLA head-split transpose),
#   writes a lane-dense (tq, D) output slab into a (B, S, D) array (free merge),
#   and the full f32 attention tensor (module contract).
# ----------------------------------------------------------------------------
def _mha_kernel(q_ref, k_ref, v_ref, o_ref, attn_ref, kt_ref, vt_ref, *,
                num_heads, head_dim):
    qi = pl.program_id(1)

    # Repack K/V head-major once per batch row; reused across all query tiles
    # (K/V input blocks are qi-invariant so Pallas does not re-DMA them either).
    @pl.when(qi == 0)
    def _():
        for hh in range(num_heads):
            kt_ref[hh] = k_ref[:, hh, :]
            vt_ref[hh] = v_ref[:, hh, :]

    for hh in range(num_heads):
        q = q_ref[:, hh, :]                               # (tq, hd) bf16, pre-scaled by 1/sqrt(hd)
        # Contract head_dim directly (no K transpose on the MXU path).
        energy = lax.dot_general(q, kt_ref[hh], (((1,), (1,)), ((), ())),
                                 preferred_element_type=jnp.float32)   # (tq, S) f32
        m = jnp.max(energy, axis=-1, keepdims=True)
        e = jnp.exp(energy - m)
        denom = jnp.sum(e, axis=-1, keepdims=True)
        p = e * pl.reciprocal(denom, approx=False)        # exact: p is returned to caller
        attn_ref[hh] = p
        o_ref[:, hh * head_dim:(hh + 1) * head_dim] = jnp.dot(
            p.astype(jnp.bfloat16), vt_ref[hh],
            preferred_element_type=jnp.float32).astype(o_ref.dtype)


def _choose_tq(s, num_heads, head_dim, budget_bytes):
    """VMEM-aware query-tile size (v7x has half the VMEM of v5e/v6e)."""
    d = num_heads * head_dim
    # qi-invariant VMEM: K/V blocks (double-buffered bf16) + head-major scratch copies.
    fixed = 2 * 2 * (s * d * 2) + 2 * (s * d * 2)
    # per-query-row VMEM: attn block (f32, double-buffered) + Q and O blocks (bf16).
    per_row = 2 * (num_heads * s * 4) + 2 * (d * 2) + 2 * (d * 2)
    avail = max(budget_bytes - fixed, 8 * per_row)
    cap = max(8, int(avail // per_row))
    return _pick_tile(s, min(cap, 512), 8)


def multihead_attention(qkv):
    """qkv: (B, S, 3, H, hd) bf16 (Q slot pre-scaled by 1/sqrt(hd)).

    Returns out (B, S, H*hd) bf16 (heads already merged) and attn (B, H, S, S) f32.
    """
    b, s, _, h, hd = qkv.shape
    d = h * hd
    tq = _choose_tq(s, h, hd, int(0.6 * _VMEM_CAP))
    grid = (b, s // tq)

    cost = pl.CostEstimate(
        flops=4 * b * h * s * s * hd,
        transcendentals=b * h * s * s,
        bytes_accessed=3 * b * s * d * 2 + b * s * d * 2 + b * h * s * s * 4)

    kernel = functools.partial(_mha_kernel, num_heads=h, head_dim=hd)
    return pl.pallas_call(
        kernel,
        out_shape=(
            jax.ShapeDtypeStruct((b, s, d), jnp.bfloat16),     # lane-dense merged heads
            jax.ShapeDtypeStruct((b, h, s, s), jnp.float32),   # attention probabilities
        ),
        grid=grid,
        in_specs=[
            pl.BlockSpec((None, tq, None, h, hd), lambda bi, qi: (bi, qi, 0, 0, 0)),  # Q tile
            pl.BlockSpec((None, s, None, h, hd), lambda bi, qi: (bi, 0, 1, 0, 0)),    # full K
            pl.BlockSpec((None, s, None, h, hd), lambda bi, qi: (bi, 0, 2, 0, 0)),    # full V
        ],
        out_specs=(
            pl.BlockSpec((None, tq, d), lambda bi, qi: (bi, qi, 0)),
            pl.BlockSpec((None, h, tq, s), lambda bi, qi: (bi, 0, qi, 0)),
        ),
        scratch_shapes=[pltpu.VMEM((h, s, hd), jnp.bfloat16),
                        pltpu.VMEM((h, s, hd), jnp.bfloat16)],
        compiler_params=pltpu.CompilerParams(
            # qi must stay sequential ("arbitrary"): K/V scratch repack happens at qi == 0.
            dimension_semantics=("parallel", "arbitrary"),
            vmem_limit_bytes=_VMEM_LIMIT),
        cost_estimate=cost,
    )(qkv, qkv, qkv)


# ----------------------------------------------------------------------------
# Parameters: PyTorch-layout f32 params + one-time prep (fuse / transpose / bf16 cast)
# ----------------------------------------------------------------------------
def init_params(key, vocab_size, d_model):
    ks = jax.random.split(key, 9)

    def lin(kw, kb):
        w = jax.random.normal(kw, (d_model, d_model), jnp.float32) * 0.05
        b = jax.random.normal(kb, (d_model,), jnp.float32) * 0.05
        return w, b

    return {
        "embedding": jax.random.normal(ks[0], (vocab_size, d_model), jnp.float32) * 0.05,
        "query": lin(ks[1], ks[2]),
        "key": lin(ks[3], ks[4]),
        "value": lin(ks[5], ks[6]),
        "fc_out": lin(ks[7], ks[8]),
    }


def prepare_params(params, num_heads):
    """One-time: fuse QKV, fold 1/sqrt(hd) into Q, transpose to (D_in, D_out), cast bf16."""
    d_model = params["embedding"].shape[1]
    head_dim = d_model // num_heads
    scale = 1.0 / math.sqrt(head_dim)

    wq, bq = params["query"]
    wk, bk = params["key"]
    wv, bv = params["value"]
    wo, bo = params["fc_out"]

    w_qkv = jnp.concatenate([wq * scale, wk, wv], axis=0)        # (3D, D), Q pre-scaled
    b_qkv = jnp.concatenate([bq * scale, bk, bv], axis=0)        # (3D,)

    return {
        "embedding": params["embedding"].astype(jnp.bfloat16),
        "w_qkv_t": jnp.transpose(w_qkv).astype(jnp.bfloat16),    # (D, 3D) bf16
        "b_qkv": b_qkv,                                          # f32
        "w_out_t": jnp.transpose(wo).astype(jnp.bfloat16),       # (D, D) bf16
        "b_out": bo,                                             # f32
    }


# ----------------------------------------------------------------------------
# Full module forward
# ----------------------------------------------------------------------------
def attention_forward(prep, tokens, num_heads):
    b, s = tokens.shape
    d_model = prep["w_out_t"].shape[0]
    head_dim = d_model // num_heads

    # TODO(synk): embedding gather kept as plain-JAX glue (a Pallas DMA-gather kernel
    # could fuse it, but XLA's gather is adequate and off the critical path).
    x = jnp.take(prep["embedding"], tokens, axis=0)              # (B, S, D) bf16

    # Fused QKV projection (X read once from HBM); stays bf16 for the attention kernel.
    qkv = linear(x.reshape(b * s, d_model), prep["w_qkv_t"], prep["b_qkv"],
                 out_dtype=jnp.bfloat16)                         # (B*S, 3D)
    qkv = qkv.reshape(b, s, 3, num_heads, head_dim)              # free reshape, no transpose

    out_bsd, attn = multihead_attention(qkv)                     # (B,S,D) bf16, (B,H,S,S) f32

    out = linear(out_bsd.reshape(b * s, d_model), prep["w_out_t"], prep["b_out"],
                 out_dtype=jnp.float32).reshape(b, s, d_model)   # free reshape (merge done in-kernel)
    return out, attn


# ----------------------------------------------------------------------------
# Pure-JAX (f32) reference for sanity check
# ----------------------------------------------------------------------------
def attention_ref(params, tokens, num_heads):
    b, s = tokens.shape
    emb = params["embedding"]
    d_model = emb.shape[1]
    head_dim = d_model // num_heads
    x = jnp.take(emb, tokens, axis=0)

    def lin(t, wb):
        w, bi = wb
        return t @ w.T + bi

    q = lin(x, params["query"]).reshape(b, s, num_heads, head_dim).transpose(0, 2, 1, 3)
    k = lin(x, params["key"]).reshape(b, s, num_heads, head_dim).transpose(0, 2, 1, 3)
    v = lin(x, params["value"]).reshape(b, s, num_heads, head_dim).transpose(0, 2, 1, 3)
    energy = jnp.einsum("bhqd,bhkd->bhqk", q, k) / (head_dim ** 0.5)
    attn = jax.nn.softmax(energy, axis=-1)
    out = jnp.einsum("bhqk,bhkd->bhqd", attn, v)
    out = out.transpose(0, 2, 1, 3).reshape(b, s, d_model)
    out = lin(out, params["fc_out"])
    return out, attn


if __name__ == "__main__":
    B, S = 2, 8
    D_MODEL, NUM_HEADS = 32, 4
    VOCAB = 10000

    key = jax.random.PRNGKey(0)
    kp, kt = jax.random.split(key)
    params = init_params(kp, VOCAB, D_MODEL)
    prep = prepare_params(params, NUM_HEADS)
    tokens = jax.random.randint(kt, (B, S), 0, VOCAB, dtype=jnp.int32)

    fwd = jax.jit(functools.partial(attention_forward, num_heads=NUM_HEADS))
    out, attn = fwd(prep, tokens)
    out = jax.block_until_ready(out)
    attn = jax.block_until_ready(attn)

    out_r, attn_r = attention_ref(params, tokens, NUM_HEADS)
    assert out.shape == (B, S, D_MODEL)
    assert attn.shape == (B, NUM_HEADS, S, S)
    # bf16 MXU operands (f32 accumulation, f32 softmax) vs a pure-f32 reference:
    # tolerance consistent with bf16 rounding (documented module-contract deviation).
    assert jnp.allclose(out, out_r, atol=2e-2, rtol=2e-2), float(jnp.max(jnp.abs(out - out_r)))
    assert jnp.allclose(attn, attn_r, atol=2e-2, rtol=2e-2), float(jnp.max(jnp.abs(attn - attn_r)))
    assert jnp.allclose(attn.sum(-1), 1.0, atol=1e-3)

    print("KERNEL_OK")
</pallas_src>

<mosaic_0001>
module attributes {stable_mosaic.version = 11 : i64} {
  func.func @_linear_kernel(%arg0: i32, %arg1: i32, %arg2: i32, %arg3: memref<16x32xbf16, #tpu.memory_space<vmem>>, %arg4: memref<32x96xbf16, #tpu.memory_space<vmem>>, %arg5: memref<1x96xf32, #tpu.memory_space<vmem>>, %arg6: memref<16x96xbf16, #tpu.memory_space<vmem>>, %arg7: memref<16x96xf32, #tpu.memory_space<vmem>>) attributes {dimension_semantics = [#tpu.dimension_semantics<parallel>, #tpu.dimension_semantics<parallel>, #tpu.dimension_semantics<arbitrary>], iteration_bounds = array<i64: 1, 1, 1>, scalar_prefetch = 0 : i64, scratch_operands = 1 : i64, tpu.core_type = #tpu.core_type<tc>, window_params = [{transform_indices = @transform_0, window_bounds = array<i64: 16, 32>}, {transform_indices = @transform_1, window_bounds = array<i64: 32, 96>}, {transform_indices = @transform_2, window_bounds = array<i64: 1, 96>}, {transform_indices = @transform_3, window_bounds = array<i64: 16, 96>}]} {
    %c0_i32 = arith.constant 0 : i32
    %0 = arith.cmpi eq, %arg2, %c0_i32 : i32
    %1 = arith.extui %0 : i1 to i32
    %c0_i32_0 = arith.constant 0 : i32
    %2 = arith.cmpi ne, %1, %c0_i32_0 : i32
    scf.if %2 {
      %cst_10 = arith.constant 0.000000e+00 : f32
      %12 = vector.broadcast %cst_10 : f32 to vector<16x96xf32>
      %c0_11 = arith.constant 0 : index
      %c0_12 = arith.constant 0 : index
      %13 = vector.load %arg7[%c0_11, %c0_12] : memref<16x96xf32, #tpu.memory_space<vmem>>, vector<16x96xf32>
      tpu.vector_store %arg7[%c0_11, %c0_12], %12 {strides = array<i32>} : memref<16x96xf32, #tpu.memory_space<vmem>>, vector<16x96xf32>,
    } else {
    }
    %c0 = arith.constant 0 : index
    %c0_1 = arith.constant 0 : index
    %3 = vector.load %arg7[%c0, %c0_1] : memref<16x96xf32, #tpu.memory_space<vmem>>, vector<16x96xf32>
    %c0_2 = arith.constant 0 : index
    %c0_3 = arith.constant 0 : index
    %4 = vector.load %arg3[%c0_2, %c0_3] : memref<16x32xbf16, #tpu.memory_space<vmem>>, vector<16x32xbf16>
    %c0_4 = arith.constant 0 : index
    %c0_5 = arith.constant 0 : index
    %5 = vector.load %arg4[%c0_4, %c0_5] : memref<32x96xbf16, #tpu.memory_space<vmem>>, vector<32x96xbf16>
    %cst = arith.constant dense<0.000000e+00> : vector<16x96xf32>
    %6 = tpu.matmul %4, %5, %cst {dimension_numbers = #tpu.dot_dimension_numbers<[1], [0], [0], [1], [0, 0, 1, 1], [], []>} : vector<16x32xbf16>, vector<32x96xbf16>, vector<16x96xf32> -> vector<16x96xf32>
    %7 = arith.addf %3, %6 : vector<16x96xf32>
    %c0_6 = arith.constant 0 : index
    %c0_7 = arith.constant 0 : index
    %8 = vector.load %arg7[%c0_6, %c0_7] : memref<16x96xf32, #tpu.memory_space<vmem>>, vector<16x96xf32>
    tpu.vector_store %arg7[%c0_6, %c0_7], %7 {strides = array<i32>} : memref<16x96xf32, #tpu.memory_space<vmem>>, vector<16x96xf32>,
    %c0_i32_8 = arith.constant 0 : i32
    %9 = arith.cmpi eq, %arg2, %c0_i32_8 : i32
    %10 = arith.extui %9 : i1 to i32
    %c0_i32_9 = arith.constant 0 : i32
    %11 = arith.cmpi ne, %10, %c0_i32_9 : i32
    scf.if %11 {
      %c0_10 = arith.constant 0 : index
      %c0_11 = arith.constant 0 : index
      %12 = vector.load %arg7[%c0_10, %c0_11] : memref<16x96xf32, #tpu.memory_space<vmem>>, vector<16x96xf32>
      %c0_12 = arith.constant 0 : index
      %c0_13 = arith.constant 0 : index
      %13 = vector.load %arg5[%c0_12, %c0_13] : memref<1x96xf32, #tpu.memory_space<vmem>>, vector<1x96xf32>
      %14 = vector.broadcast %13 : vector<1x96xf32> to vector<16x96xf32>
      %15 = arith.addf %12, %14 : vector<16x96xf32>
      %16 = arith.truncf %15 : vector<16x96xf32> to vector<16x96xbf16>
      %c0_14 = arith.constant 0 : index
      %c0_15 = arith.constant 0 : index
      %17 = vector.load %arg6[%c0_14, %c0_15] : memref<16x96xbf16, #tpu.memory_space<vmem>>, vector<16x96xbf16>
      tpu.vector_store %arg6[%c0_14, %c0_15], %16 {strides = array<i32>} : memref<16x96xbf16, #tpu.memory_space<vmem>>, vector<16x96xbf16>,
    } else {
    }
    return
  }
  func.func @transform_0(%arg0: i32, %arg1: i32, %arg2: i32) -> (i32, i32) {
    %c0_i32 = arith.constant 0 : i32
    return %arg0, %arg2 : i32, i32
  }
  func.func @transform_1(%arg0: i32, %arg1: i32, %arg2: i32) -> (i32, i32) {
    %c0_i32 = arith.constant 0 : i32
    return %arg2, %arg1 : i32, i32
  }
  func.func @transform_2(%arg0: i32, %arg1: i32, %arg2: i32) -> (i32, i32) {
    %c0_i32 = arith.constant 0 : i32
    %c0_i32_0 = arith.constant 0 : i32
    return %c0_i32, %arg1 : i32, i32
  }
  func.func @transform_3(%arg0: i32, %arg1: i32, %arg2: i32) -> (i32, i32) {
    %c0_i32 = arith.constant 0 : i32
    return %arg0, %arg1 : i32, i32
  }
}

module attributes {stable_mosaic.version = 11 : i64} {
  func.func @_mha_kernel(%arg0: i32, %arg1: i32, %arg2: memref<1x8x1x4x8xbf16, #tpu.memory_space<vmem>>, %arg3: memref<1x8x1x4x8xbf16, #tpu.memory_space<vmem>>, %arg4: memref<1x8x1x4x8xbf16, #tpu.memory_space<vmem>>, %arg5: memref<1x8x32xbf16, #tpu.memory_space<vmem>>, %arg6: memref<1x4x8x8xf32, #tpu.memory_space<vmem>>, %arg7: memref<4x8x8xbf16, #tpu.memory_space<vmem>>, %arg8: memref<4x8x8xbf16, #tpu.memory_space<vmem>>) attributes {dimension_semantics = [#tpu.dimension_semantics<parallel>, #tpu.dimension_semantics<arbitrary>], iteration_bounds = array<i64: 2, 1>, scalar_prefetch = 0 : i64, scratch_operands = 2 : i64, tpu.core_type = #tpu.core_type<tc>, window_params = [{transform_indices = @transform_0, window_bounds = array<i64: 1, 8, 1, 4, 8>}, {transform_indices = @transform_1, window_bounds = array<i64: 1, 8, 1, 4, 8>}, {transform_indices = @transform_2, window_bounds = array<i64: 1, 8, 1, 4, 8>}, {transform_indices = @transform_3, window_bounds = array<i64: 1, 8, 32>}, {transform_indices = @transform_4, window_bounds = array<i64: 1, 4, 8, 8>}]} {
    %c0_i32 = arith.constant 0 : i32
    %0 = arith.cmpi eq, %arg1, %c0_i32 : i32
    %1 = arith.extui %0 : i1 to i32
    %c0_i32_0 = arith.constant 0 : i32
    %2 = arith.cmpi ne, %1, %c0_i32_0 : i32
    scf.if %2 {
      %c0_81 = arith.constant 0 : index
      %c0_82 = arith.constant 0 : index
      %c0_83 = arith.constant 0 : index
      %c0_84 = arith.constant 0 : index
      %c0_85 = arith.constant 0 : index
      %107 = vector.load %arg3[%c0_81, %c0_82, %c0_83, %c0_84, %c0_85] : memref<1x8x1x4x8xbf16, #tpu.memory_space<vmem>>, vector<1x8x1x1x8xbf16>
      %108 = vector.shape_cast %107 : vector<1x8x1x1x8xbf16> to vector<8x8xbf16>
      %c0_86 = arith.constant 0 : index
      %c0_87 = arith.constant 0 : index
      %c0_88 = arith.constant 0 : index
      %109 = vector.load %arg7[%c0_86, %c0_87, %c0_88] : memref<4x8x8xbf16, #tpu.memory_space<vmem>>, vector<1x8x8xbf16>
      %110 = vector.shape_cast %109 : vector<1x8x8xbf16> to vector<8x8xbf16>
      %111 = vector.shape_cast %108 : vector<8x8xbf16> to vector<1x8x8xbf16>
      tpu.vector_store %arg7[%c0_86, %c0_87, %c0_88], %111 {strides = array<i32>} : memref<4x8x8xbf16, #tpu.memory_space<vmem>>, vector<1x8x8xbf16>,
      %c0_89 = arith.constant 0 : index
      %c0_90 = arith.constant 0 : index
      %c0_91 = arith.constant 0 : index
      %c0_92 = arith.constant 0 : index
      %c0_93 = arith.constant 0 : index
      %112 = vector.load %arg4[%c0_89, %c0_90, %c0_91, %c0_92, %c0_93] : memref<1x8x1x4x8xbf16, #tpu.memory_space<vmem>>, vector<1x8x1x1x8xbf16>
      %113 = vector.shape_cast %112 : vector<1x8x1x1x8xbf16> to vector<8x8xbf16>
      %c0_94 = arith.constant 0 : index
      %c0_95 = arith.constant 0 : index
      %c0_96 = arith.constant 0 : index
      %114 = vector.load %arg8[%c0_94, %c0_95, %c0_96] : memref<4x8x8xbf16, #tpu.memory_space<vmem>>, vector<1x8x8xbf16>
      %115 = vector.shape_cast %114 : vector<1x8x8xbf16> to vector<8x8xbf16>
      %116 = vector.shape_cast %113 : vector<8x8xbf16> to vector<1x8x8xbf16>
      tpu.vector_store %arg8[%c0_94, %c0_95, %c0_96], %116 {strides = array<i32>} : memref<4x8x8xbf16, #tpu.memory_space<vmem>>, vector<1x8x8xbf16>,
      %c0_97 = arith.constant 0 : index
      %c0_98 = arith.constant 0 : index
      %c0_99 = arith.constant 0 : index
      %c1_100 = arith.constant 1 : index
      %c0_101 = arith.constant 0 : index
      %117 = vector.load %arg3[%c0_97, %c0_98, %c0_99, %c1_100, %c0_101] : memref<1x8x1x4x8xbf16, #tpu.memory_space<vmem>>, vector<1x8x1x1x8xbf16>
      %118 = vector.shape_cast %117 : vector<1x8x1x1x8xbf16> to vector<8x8xbf16>
      %c1_102 = arith.constant 1 : index
      %c0_103 = arith.constant 0 : index
      %c0_104 = arith.constant 0 : index
      %119 = vector.load %arg7[%c1_102, %c0_103, %c0_104] : memref<4x8x8xbf16, #tpu.memory_space<vmem>>, vector<1x8x8xbf16>
      %120 = vector.shape_cast %119 : vector<1x8x8xbf16> to vector<8x8xbf16>
      %121 = vector.shape_cast %118 : vector<8x8xbf16> to vector<1x8x8xbf16>
      tpu.vector_store %arg7[%c1_102, %c0_103, %c0_104], %121 {strides = array<i32>} : memref<4x8x8xbf16, #tpu.memory_space<vmem>>, vector<1x8x8xbf16>,
      %c0_105 = arith.constant 0 : index
      %c0_106 = arith.constant 0 : index
      %c0_107 = arith.constant 0 : index
      %c1_108 = arith.constant 1 : index
      %c0_109 = arith.constant 0 : index
      %122 = vector.load %arg4[%c0_105, %c0_106, %c0_107, %c1_108, %c0_109] : memref<1x8x1x4x8xbf16, #tpu.memory_space<vmem>>, vector<1x8x1x1x8xbf16>
      %123 = vector.shape_cast %122 : vector<1x8x1x1x8xbf16> to vector<8x8xbf16>
      %c1_110 = arith.constant 1 : index
      %c0_111 = arith.constant 0 : index
      %c0_112 = arith.constant 0 : index
      %124 = vector.load %arg8[%c1_110, %c0_111, %c0_112] : memref<4x8x8xbf16, #tpu.memory_space<vmem>>, vector<1x8x8xbf16>
      %125 = vector.shape_cast %124 : vector<1x8x8xbf16> to vector<8x8xbf16>
      %126 = vector.shape_cast %123 : vector<8x8xbf16> to vector<1x8x8xbf16>
      tpu.vector_store %arg8[%c1_110, %c0_111, %c0_112], %126 {strides = array<i32>} : memref<4x8x8xbf16, #tpu.memory_space<vmem>>, vector<1x8x8xbf16>,
      %c0_113 = arith.constant 0 : index
      %c0_114 = arith.constant 0 : index
      %c0_115 = arith.constant 0 : index
      %c2_116 = arith.constant 2 : index
      %c0_117 = arith.constant 0 : index
      %127 = vector.load %arg3[%c0_113, %c0_114, %c0_115, %c2_116, %c0_117] : memref<1x8x1x4x8xbf16, #tpu.memory_space<vmem>>, vector<1x8x1x1x8xbf16>
      %128 = vector.shape_cast %127 : vector<1x8x1x1x8xbf16> to vector<8x8xbf16>
      %c2_118 = arith.constant 2 : index
      %c0_119 = arith.constant 0 : index
      %c0_120 = arith.constant 0 : index
      %129 = vector.load %arg7[%c2_118, %c0_119, %c0_120] : memref<4x8x8xbf16, #tpu.memory_space<vmem>>, vector<1x8x8xbf16>
      %130 = vector.shape_cast %129 : vector<1x8x8xbf16> to vector<8x8xbf16>
      %131 = vector.shape_cast %128 : vector<8x8xbf16> to vector<1x8x8xbf16>
      tpu.vector_store %arg7[%c2_118, %c0_119, %c0_120], %131 {strides = array<i32>} : memref<4x8x8xbf16, #tpu.memory_space<vmem>>, vector<1x8x8xbf16>,
      %c0_121 = arith.constant 0 : index
      %c0_122 = arith.constant 0 : index
      %c0_123 = arith.constant 0 : index
      %c2_124 = arith.constant 2 : index
      %c0_125 = arith.constant 0 : index
      %132 = vector.load %arg4[%c0_121, %c0_122, %c0_123, %c2_124, %c0_125] : memref<1x8x1x4x8xbf16, #tpu.memory_space<vmem>>, vector<1x8x1x1x8xbf16>
      %133 = vector.shape_cast %132 : vector<1x8x1x1x8xbf16> to vector<8x8xbf16>
      %c2_126 = arith.constant 2 : index
      %c0_127 = arith.constant 0 : index
      %c0_128 = arith.constant 0 : index
      %134 = vector.load %arg8[%c2_126, %c0_127, %c0_128] : memref<4x8x8xbf16, #tpu.memory_space<vmem>>, vector<1x8x8xbf16>
      %135 = vector.shape_cast %134 : vector<1x8x8xbf16> to vector<8x8xbf16>
      %136 = vector.shape_cast %133 : vector<8x8xbf16> to vector<1x8x8xbf16>
      tpu.vector_store %arg8[%c2_126, %c0_127, %c0_128], %136 {strides = array<i32>} : memref<4x8x8xbf16, #tpu.memory_space<vmem>>, vector<1x8x8xbf16>,
      %c0_129 = arith.constant 0 : index
      %c0_130 = arith.constant 0 : index
      %c0_131 = arith.constant 0 : index
      %c3_132 = arith.constant 3 : index
      %c0_133 = arith.constant 0 : index
      %137 = vector.load %arg3[%c0_129, %c0_130, %c0_131, %c3_132, %c0_133] : memref<1x8x1x4x8xbf16, #tpu.memory_space<vmem>>, vector<1x8x1x1x8xbf16>
      %138 = vector.shape_cast %137 : vector<1x8x1x1x8xbf16> to vector<8x8xbf16>
      %c3_134 = arith.constant 3 : index
      %c0_135 = arith.constant 0 : index
      %c0_136 = arith.constant 0 : index
      %139 = vector.load %arg7[%c3_134, %c0_135, %c0_136] : memref<4x8x8xbf16, #tpu.memory_space<vmem>>, vector<1x8x8xbf16>
      %140 = vector.shape_cast %139 : vector<1x8x8xbf16> to vector<8x8xbf16>
      %141 = vector.shape_cast %138 : vector<8x8xbf16> to vector<1x8x8xbf16>
      tpu.vector_store %arg7[%c3_134, %c0_135, %c0_136], %141 {strides = array<i32>} : memref<4x8x8xbf16, #tpu.memory_space<vmem>>, vector<1x8x8xbf16>,
      %c0_137 = arith.constant 0 : index
      %c0_138 = arith.constant 0 : index
      %c0_139 = arith.constant 0 : index
      %c3_140 = arith.constant 3 : index
      %c0_141 = arith.constant 0 : index
      %142 = vector.load %arg4[%c0_137, %c0_138, %c0_139, %c3_140, %c0_141] : memref<1x8x1x4x8xbf16, #tpu.memory_space<vmem>>, vector<1x8x1x1x8xbf16>
      %143 = vector.shape_cast %142 : vector<1x8x1x1x8xbf16> to vector<8x8xbf16>
      %c3_142 = arith.constant 3 : index
      %c0_143 = arith.constant 0 : index
      %c0_144 = arith.constant 0 : index
      %144 = vector.load %arg8[%c3_142, %c0_143, %c0_144] : memref<4x8x8xbf16, #tpu.memory_space<vmem>>, vector<1x8x8xbf16>
      %145 = vector.shape_cast %144 : vector<1x8x8xbf16> to vector<8x8xbf16>
      %146 = vector.shape_cast %143 : vector<8x8xbf16> to vector<1x8x8xbf16>
      tpu.vector_store %arg8[%c3_142, %c0_143, %c0_144], %146 {strides = array<i32>} : memref<4x8x8xbf16, #tpu.memory_space<vmem>>, vector<1x8x8xbf16>,
    } else {
    }
    %c0 = arith.constant 0 : index
    %c0_1 = arith.constant 0 : index
    %c0_2 = arith.constant 0 : index
    %c0_3 = arith.constant 0 : index
    %c0_4 = arith.constant 0 : index
    %3 = vector.load %arg2[%c0, %c0_1, %c0_2, %c0_3, %c0_4] : memref<1x8x1x4x8xbf16, #tpu.memory_space<vmem>>, vector<1x8x1x1x8xbf16>
    %4 = vector.shape_cast %3 : vector<1x8x1x1x8xbf16> to vector<8x8xbf16>
    %c0_5 = arith.constant 0 : index
    %c0_6 = arith.constant 0 : index
    %c0_7 = arith.constant 0 : index
    %5 = vector.load %arg7[%c0_5, %c0_6, %c0_7] : memref<4x8x8xbf16, #tpu.memory_space<vmem>>, vector<1x8x8xbf16>
    %6 = vector.shape_cast %5 : vector<1x8x8xbf16> to vector<8x8xbf16>
    %cst = arith.constant dense<0.000000e+00> : vector<8x8xf32>
    %7 = tpu.matmul %4, %6, %cst {dimension_numbers = #tpu.dot_dimension_numbers<[1], [1], [0], [0], [0, 0, 1, 0], [], []>} : vector<8x8xbf16>, vector<8x8xbf16>, vector<8x8xf32> -> vector<8x8xf32>
    %cst_8 = arith.constant dense<0xFF800000> : vector<8xf32>
    %8 = vector.multi_reduction <maximumf>, %7, %cst_8 [1] : vector<8x8xf32> to vector<8xf32>
    %9 = vector.shape_cast %8 : vector<8xf32> to vector<8x1xf32>
    %10 = vector.broadcast %9 : vector<8x1xf32> to vector<8x8xf32>
    %11 = arith.subf %7, %10 : vector<8x8xf32>
    %12 = math.exp %11 : vector<8x8xf32>
    %cst_9 = arith.constant dense<0.000000e+00> : vector<8xf32>
    %13 = vector.multi_reduction <add>, %12, %cst_9 [1] : vector<8x8xf32> to vector<8xf32>
    %14 = vector.shape_cast %13 : vector<8xf32> to vector<8x1xf32>
    %15 = tpu.reciprocal %14 : vector<8x1xf32> -> vector<8x1xf32>
    %16 = vector.broadcast %15 : vector<8x1xf32> to vector<8x8xf32>
    %17 = arith.mulf %12, %16 : vector<8x8xf32>
    %c0_10 = arith.constant 0 : index
    %c0_11 = arith.constant 0 : index
    %c0_12 = arith.constant 0 : index
    %c0_13 = arith.constant 0 : index
    %18 = vector.load %arg6[%c0_10, %c0_11, %c0_12, %c0_13] : memref<1x4x8x8xf32, #tpu.memory_space<vmem>>, vector<1x1x8x8xf32>
    %19 = vector.shape_cast %18 : vector<1x1x8x8xf32> to vector<8x8xf32>
    %20 = vector.shape_cast %17 : vector<8x8xf32> to vector<1x1x8x8xf32>
    tpu.vector_store %arg6[%c0_10, %c0_11, %c0_12, %c0_13], %20 {strides = array<i32>} : memref<1x4x8x8xf32, #tpu.memory_space<vmem>>, vector<1x1x8x8xf32>,
    %21 = arith.truncf %17 : vector<8x8xf32> to vector<8x8xbf16>
    %c0_14 = arith.constant 0 : index
    %c0_15 = arith.constant 0 : index
    %c0_16 = arith.constant 0 : index
    %22 = vector.load %arg8[%c0_14, %c0_15, %c0_16] : memref<4x8x8xbf16, #tpu.memory_space<vmem>>, vector<1x8x8xbf16>
    %23 = vector.shape_cast %22 : vector<1x8x8xbf16> to vector<8x8xbf16>
    %cst_17 = arith.constant dense<0.000000e+00> : vector<8x8xf32>
    %24 = tpu.matmul %21, %23, %cst_17 {dimension_numbers = #tpu.dot_dimension_numbers<[1], [0], [0], [1], [0, 0, 1, 1], [], []>} : vector<8x8xbf16>, vector<8x8xbf16>, vector<8x8xf32> -> vector<8x8xf32>
    %25 = arith.truncf %24 : vector<8x8xf32> to vector<8x8xbf16>
    %c0_18 = arith.constant 0 : index
    %c0_19 = arith.constant 0 : index
    %c0_20 = arith.constant 0 : index
    %26 = vector.load %arg5[%c0_18, %c0_19, %c0_20] : memref<1x8x32xbf16, #tpu.memory_space<vmem>>, vector<1x8x8xbf16>
    %27 = vector.shape_cast %26 : vector<1x8x8xbf16> to vector<8x8xbf16>
    %28 = vector.shape_cast %25 : vector<8x8xbf16> to vector<1x8x8xbf16>
    tpu.vector_store %arg5[%c0_18, %c0_19, %c0_20], %28 {strides = array<i32>} : memref<1x8x32xbf16, #tpu.memory_space<vmem>>, vector<1x8x8xbf16>,
    %c0_21 = arith.constant 0 : index
    %c0_22 = arith.constant 0 : index
    %c0_23 = arith.constant 0 : index
    %c1 = arith.constant 1 : index
    %c0_24 = arith.constant 0 : index
    %29 = vector.load %arg2[%c0_21, %c0_22, %c0_23, %c1, %c0_24] : memref<1x8x1x4x8xbf16, #tpu.memory_space<vmem>>, vector<1x8x1x1x8xbf16>
    %30 = vector.shape_cast %29 : vector<1x8x1x1x8xbf16> to vector<8x8xbf16>
    %c1_25 = arith.constant 1 : index
    %c0_26 = arith.constant 0 : index
    %c0_27 = arith.constant 0 : index
    %31 = vector.load %arg7[%c1_25, %c0_26, %c0_27] : memref<4x8x8xbf16, #tpu.memory_space<vmem>>, vector<1x8x8xbf16>
    %32 = vector.shape_cast %31 : vector<1x8x8xbf16> to vector<8x8xbf16>
    %cst_28 = arith.constant dense<0.000000e+00> : vector<8x8xf32>
    %33 = tpu.matmul %30, %32, %cst_28 {dimension_numbers = #tpu.dot_dimension_numbers<[1], [1], [0], [0], [0, 0, 1, 0], [], []>} : vector<8x8xbf16>, vector<8x8xbf16>, vector<8x8xf32> -> vector<8x8xf32>
    %cst_29 = arith.constant dense<0xFF800000> : vector<8xf32>
    %34 = vector.multi_reduction <maximumf>, %33, %cst_29 [1] : vector<8x8xf32> to vector<8xf32>
    %35 = vector.shape_cast %34 : vector<8xf32> to vector<8x1xf32>
    %36 = vector.broadcast %35 : vector<8x1xf32> to vector<8x8xf32>
    %37 = arith.subf %33, %36 : vector<8x8xf32>
    %38 = math.exp %37 : vector<8x8xf32>
    %cst_30 = arith.constant dense<0.000000e+00> : vector<8xf32>
    %39 = vector.multi_reduction <add>, %38, %cst_30 [1] : vector<8x8xf32> to vector<8xf32>
    %40 = vector.shape_cast %39 : vector<8xf32> to vector<8x1xf32>
    %41 = tpu.reciprocal %40 : vector<8x1xf32> -> vector<8x1xf32>
    %42 = vector.broadcast %41 : vector<8x1xf32> to vector<8x8xf32>
    %43 = arith.mulf %38, %42 : vector<8x8xf32>
    %c0_31 = arith.constant 0 : index
    %c1_32 = arith.constant 1 : index
    %c0_33 = arith.constant 0 : index
    %c0_34 = arith.constant 0 : index
    %44 = vector.load %arg6[%c0_31, %c1_32, %c0_33, %c0_34] : memref<1x4x8x8xf32, #tpu.memory_space<vmem>>, vector<1x1x8x8xf32>
    %45 = vector.shape_cast %44 : vector<1x1x8x8xf32> to vector<8x8xf32>
    %46 = vector.shape_cast %43 : vector<8x8xf32> to vector<1x1x8x8xf32>
    tpu.vector_store %arg6[%c0_31, %c1_32, %c0_33, %c0_34], %46 {strides = array<i32>} : memref<1x4x8x8xf32, #tpu.memory_space<vmem>>, vector<1x1x8x8xf32>,
    %47 = arith.truncf %43 : vector<8x8xf32> to vector<8x8xbf16>
    %c1_35 = arith.constant 1 : index
    %c0_36 = arith.constant 0 : index
    %c0_37 = arith.constant 0 : index
    %48 = vector.load %arg8[%c1_35, %c0_36, %c0_37] : memref<4x8x8xbf16, #tpu.memory_space<vmem>>, vector<1x8x8xbf16>
    %49 = vector.shape_cast %48 : vector<1x8x8xbf16> to vector<8x8xbf16>
    %cst_38 = arith.constant dense<0.000000e+00> : vector<8x8xf32>
    %50 = tpu.matmul %47, %49, %cst_38 {dimension_numbers = #tpu.dot_dimension_numbers<[1], [0], [0], [1], [0, 0, 1, 1], [], []>} : vector<8x8xbf16>, vector<8x8xbf16>, vector<8x8xf32> -> vector<8x8xf32>
    %51 = arith.truncf %50 : vector<8x8xf32> to vector<8x8xbf16>
    %c0_39 = arith.constant 0 : index
    %c0_40 = arith.constant 0 : index
    %c8 = arith.constant 8 : index
    %52 = vector.load %arg5[%c0_39, %c0_40, %c8] : memref<1x8x32xbf16, #tpu.memory_space<vmem>>, vector<1x8x8xbf16>
    %53 = vector.shape_cast %52 : vector<1x8x8xbf16> to vector<8x8xbf16>
    %54 = vector.shape_cast %51 : vector<8x8xbf16> to vector<1x8x8xbf16>
    tpu.vector_store %arg5[%c0_39, %c0_40, %c8], %54 {strides = array<i32>} : memref<1x8x32xbf16, #tpu.memory_space<vmem>>, vector<1x8x8xbf16>,
    %c0_41 = arith.constant 0 : index
    %c0_42 = arith.constant 0 : index
    %c0_43 = arith.constant 0 : index
    %c2 = arith.constant 2 : index
    %c0_44 = arith.constant 0 : index
    %55 = vector.load %arg2[%c0_41, %c0_42, %c0_43, %c2, %c0_44] : memref<1x8x1x4x8xbf16, #tpu.memory_space<vmem>>, vector<1x8x1x1x8xbf16>
    %56 = vector.shape_cast %55 : vector<1x8x1x1x8xbf16> to vector<8x8xbf16>
    %c2_45 = arith.constant 2 : index
    %c0_46 = arith.constant 0 : index
    %c0_47 = arith.constant 0 : index
    %57 = vector.load %arg7[%c2_45, %c0_46, %c0_47] : memref<4x8x8xbf16, #tpu.memory_space<vmem>>, vector<1x8x8xbf16>
    %58 = vector.shape_cast %57 : vector<1x8x8xbf16> to vector<8x8xbf16>
    %cst_48 = arith.constant dense<0.000000e+00> : vector<8x8xf32>
    %59 = tpu.matmul %56, %58, %cst_48 {dimension_numbers = #tpu.dot_dimension_numbers<[1], [1], [0], [0], [0, 0, 1, 0], [], []>} : vector<8x8xbf16>, vector<8x8xbf16>, vector<8x8xf32> -> vector<8x8xf32>
    %cst_49 = arith.constant dense<0xFF800000> : vector<8xf32>
    %60 = vector.multi_reduction <maximumf>, %59, %cst_49 [1] : vector<8x8xf32> to vector<8xf32>
    %61 = vector.shape_cast %60 : vector<8xf32> to vector<8x1xf32>
    %62 = vector.broadcast %61 : vector<8x1xf32> to vector<8x8xf32>
    %63 = arith.subf %59, %62 : vector<8x8xf32>
    %64 = math.exp %63 : vector<8x8xf32>
    %cst_50 = arith.constant dense<0.000000e+00> : vector<8xf32>
    %65 = vector.multi_reduction <add>, %64, %cst_50 [1] : vector<8x8xf32> to vector<8xf32>
    %66 = vector.shape_cast %65 : vector<8xf32> to vector<8x1xf32>
    %67 = tpu.reciprocal %66 : vector<8x1xf32> -> vector<8x1xf32>
    %68 = vector.broadcast %67 : vector<8x1xf32> to vector<8x8xf32>
    %69 = arith.mulf %64, %68 : vector<8x8xf32>
    %c0_51 = arith.constant 0 : index
    %c2_52 = arith.constant 2 : index
    %c0_53 = arith.constant 0 : index
    %c0_54 = arith.constant 0 : index
    %70 = vector.load %arg6[%c0_51, %c2_52, %c0_53, %c0_54] : memref<1x4x8x8xf32, #tpu.memory_space<vmem>>, vector<1x1x8x8xf32>
    %71 = vector.shape_cast %70 : vector<1x1x8x8xf32> to vector<8x8xf32>
    %72 = vector.shape_cast %69 : vector<8x8xf32> to vector<1x1x8x8xf32>
    tpu.vector_store %arg6[%c0_51, %c2_52, %c0_53, %c0_54], %72 {strides = array<i32>} : memref<1x4x8x8xf32, #tpu.memory_space<vmem>>, vector<1x1x8x8xf32>,
    %73 = arith.truncf %69 : vector<8x8xf32> to vector<8x8xbf16>
    %c2_55 = arith.constant 2 : index
    %c0_56 = arith.constant 0 : index
    %c0_57 = arith.constant 0 : index
    %74 = vector.load %arg8[%c2_55, %c0_56, %c0_57] : memref<4x8x8xbf16, #tpu.memory_space<vmem>>, vector<1x8x8xbf16>
    %75 = vector.shape_cast %74 : vector<1x8x8xbf16> to vector<8x8xbf16>
    %cst_58 = arith.constant dense<0.000000e+00> : vector<8x8xf32>
    %76 = tpu.matmul %73, %75, %cst_58 {dimension_numbers = #tpu.dot_dimension_numbers<[1], [0], [0], [1], [0, 0, 1, 1], [], []>} : vector<8x8xbf16>, vector<8x8xbf16>, vector<8x8xf32> -> vector<8x8xf32>
    %77 = arith.truncf %76 : vector<8x8xf32> to vector<8x8xbf16>
    %c0_59 = arith.constant 0 : index
    %c0_60 = arith.constant 0 : index
    %c16 = arith.constant 16 : index
    %78 = vector.load %arg5[%c0_59, %c0_60, %c16] : memref<1x8x32xbf16, #tpu.memory_space<vmem>>, vector<1x8x8xbf16>
    %79 = vector.shape_cast %78 : vector<1x8x8xbf16> to vector<8x8xbf16>
    %80 = vector.shape_cast %77 : vector<8x8xbf16> to vector<1x8x8xbf16>
    tpu.vector_store %arg5[%c0_59, %c0_60, %c16], %80 {strides = array<i32>} : memref<1x8x32xbf16, #tpu.memory_space<vmem>>, vector<1x8x8xbf16>,
    %c0_61 = arith.constant 0 : index
    %c0_62 = arith.constant 0 : index
    %c0_63 = arith.constant 0 : index
    %c3 = arith.constant 3 : index
    %c0_64 = arith.constant 0 : index
    %81 = vector.load %arg2[%c0_61, %c0_62, %c0_63, %c3, %c0_64] : memref<1x8x1x4x8xbf16, #tpu.memory_space<vmem>>, vector<1x8x1x1x8xbf16>
    %82 = vector.shape_cast %81 : vector<1x8x1x1x8xbf16> to vector<8x8xbf16>
    %c3_65 = arith.constant 3 : index
    %c0_66 = arith.constant 0 : index
    %c0_67 = arith.constant 0 : index
    %83 = vector.load %arg7[%c3_65, %c0_66, %c0_67] : memref<4x8x8xbf16, #tpu.memory_space<vmem>>, vector<1x8x8xbf16>
    %84 = vector.shape_cast %83 : vector<1x8x8xbf16> to vector<8x8xbf16>
    %cst_68 = arith.constant dense<0.000000e+00> : vector<8x8xf32>
    %85 = tpu.matmul %82, %84, %cst_68 {dimension_numbers = #tpu.dot_dimension_numbers<[1], [1], [0], [0], [0, 0, 1, 0], [], []>} : vector<8x8xbf16>, vector<8x8xbf16>, vector<8x8xf32> -> vector<8x8xf32>
    %cst_69 = arith.constant dense<0xFF800000> : vector<8xf32>
    %86 = vector.multi_reduction <maximumf>, %85, %cst_69 [1] : vector<8x8xf32> to vector<8xf32>
    %87 = vector.shape_cast %86 : vector<8xf32> to vector<8x1xf32>
    %88 = vector.broadcast %87 : vector<8x1xf32> to vector<8x8xf32>
    %89 = arith.subf %85, %88 : vector<8x8xf32>
    %90 = math.exp %89 : vector<8x8xf32>
    %cst_70 = arith.constant dense<0.000000e+00> : vector<8xf32>
    %91 = vector.multi_reduction <add>, %90, %cst_70 [1] : vector<8x8xf32> to vector<8xf32>
    %92 = vector.shape_cast %91 : vector<8xf32> to vector<8x1xf32>
    %93 = tpu.reciprocal %92 : vector<8x1xf32> -> vector<8x1xf32>
    %94 = vector.broadcast %93 : vector<8x1xf32> to vector<8x8xf32>
    %95 = arith.mulf %90, %94 : vector<8x8xf32>
    %c0_71 = arith.constant 0 : index
    %c3_72 = arith.constant 3 : index
    %c0_73 = arith.constant 0 : index
    %c0_74 = arith.constant 0 : index
    %96 = vector.load %arg6[%c0_71, %c3_72, %c0_73, %c0_74] : memref<1x4x8x8xf32, #tpu.memory_space<vmem>>, vector<1x1x8x8xf32>
    %97 = vector.shape_cast %96 : vector<1x1x8x8xf32> to vector<8x8xf32>
    %98 = vector.shape_cast %95 : vector<8x8xf32> to vector<1x1x8x8xf32>
    tpu.vector_store %arg6[%c0_71, %c3_72, %c0_73, %c0_74], %98 {strides = array<i32>} : memref<1x4x8x8xf32, #tpu.memory_space<vmem>>, vector<1x1x8x8xf32>,
    %99 = arith.truncf %95 : vector<8x8xf32> to vector<8x8xbf16>
    %c3_75 = arith.constant 3 : index
    %c0_76 = arith.constant 0 : index
    %c0_77 = arith.constant 0 : index
    %100 = vector.load %arg8[%c3_75, %c0_76, %c0_77] : memref<4x8x8xbf16, #tpu.memory_space<vmem>>, vector<1x8x8xbf16>
    %101 = vector.shape_cast %100 : vector<1x8x8xbf16> to vector<8x8xbf16>
    %cst_78 = arith.constant dense<0.000000e+00> : vector<8x8xf32>
    %102 = tpu.matmul %99, %101, %cst_78 {dimension_numbers = #tpu.dot_dimension_numbers<[1], [0], [0], [1], [0, 0, 1, 1], [], []>} : vector<8x8xbf16>, vector<8x8xbf16>, vector<8x8xf32> -> vector<8x8xf32>
    %103 = arith.truncf %102 : vector<8x8xf32> to vector<8x8xbf16>
    %c0_79 = arith.constant 0 : index
    %c0_80 = arith.constant 0 : index
    %c24 = arith.constant 24 : index
    %104 = vector.load %arg5[%c0_79, %c0_80, %c24] : memref<1x8x32xbf16, #tpu.memory_space<vmem>>, vector<1x8x8xbf16>
    %105 = vector.shape_cast %104 : vector<1x8x8xbf16> to vector<8x8xbf16>
    %106 = vector.shape_cast %103 : vector<8x8xbf16> to vector<1x8x8xbf16>
    tpu.vector_store %arg5[%c0_79, %c0_80, %c24], %106 {strides = array<i32>} : memref<1x8x32xbf16, #tpu.memory_space<vmem>>, vector<1x8x8xbf16>,
    return
  }
  func.func @transform_0(%arg0: i32, %arg1: i32) -> (i32, i32, i32, i32, i32) {
    %c0_i32 = arith.constant 0 : i32
    %c0_i32_0 = arith.constant 0 : i32
    %c0_i32_1 = arith.constant 0 : i32
    %c0_i32_2 = arith.constant 0 : i32
    return %arg0, %arg1, %c0_i32, %c0_i32_0, %c0_i32_1 : i32, i32, i32, i32, i32
  }
  func.func @transform_1(%arg0: i32, %arg1: i32) -> (i32, i32, i32, i32, i32) {
    %c0_i32 = arith.constant 0 : i32
    %c1_i32 = arith.constant 1 : i32
    %c0_i32_0 = arith.constant 0 : i32
    %c0_i32_1 = arith.constant 0 : i32
    %c0_i32_2 = arith.constant 0 : i32
    return %arg0, %c0_i32, %c1_i32, %c0_i32_0, %c0_i32_1 : i32, i32, i32, i32, i32
  }
  func.func @transform_2(%arg0: i32, %arg1: i32) -> (i32, i32, i32, i32, i32) {
    %c0_i32 = arith.constant 0 : i32
    %c2_i32 = arith.constant 2 : i32
    %c0_i32_0 = arith.constant 0 : i32
    %c0_i32_1 = arith.constant 0 : i32
    %c0_i32_2 = arith.constant 0 : i32
    return %arg0, %c0_i32, %c2_i32, %c0_i32_0, %c0_i32_1 : i32, i32, i32, i32, i32
  }
  func.func @transform_3(%arg0: i32, %arg1: i32) -> (i32, i32, i32) {
    %c0_i32 = arith.constant 0 : i32
    %c0_i32_0 = arith.constant 0 : i32
    return %arg0, %arg1, %c0_i32 : i32, i32, i32
  }
  func.func @transform_4(%arg0: i32, %arg1: i32) -> (i32, i32, i32, i32) {
    %c0_i32 = arith.constant 0 : i32
    %c0_i32_0 = arith.constant 0 : i32
    %c0_i32_1 = arith.constant 0 : i32
    return %arg0, %c0_i32, %arg1, %c0_i32_0 : i32, i32, i32, i32
  }
}

module attributes {stable_mosaic.version = 11 : i64} {
  func.func @_linear_kernel(%arg0: i32, %arg1: i32, %arg2: i32, %arg3: memref<16x32xbf16, #tpu.memory_space<vmem>>, %arg4: memref<32x32xbf16, #tpu.memory_space<vmem>>, %arg5: memref<1x32xf32, #tpu.memory_space<vmem>>, %arg6: memref<16x32xf32, #tpu.memory_space<vmem>>, %arg7: memref<16x32xf32, #tpu.memory_space<vmem>>) attributes {dimension_semantics = [#tpu.dimension_semantics<parallel>, #tpu.dimension_semantics<parallel>, #tpu.dimension_semantics<arbitrary>], iteration_bounds = array<i64: 1, 1, 1>, scalar_prefetch = 0 : i64, scratch_operands = 1 : i64, tpu.core_type = #tpu.core_type<tc>, window_params = [{transform_indices = @transform_0, window_bounds = array<i64: 16, 32>}, {transform_indices = @transform_1, window_bounds = array<i64: 32, 32>}, {transform_indices = @transform_2, window_bounds = array<i64: 1, 32>}, {transform_indices = @transform_3, window_bounds = array<i64: 16, 32>}]} {
    %c0_i32 = arith.constant 0 : i32
    %0 = arith.cmpi eq, %arg2, %c0_i32 : i32
    %1 = arith.extui %0 : i1 to i32
    %c0_i32_0 = arith.constant 0 : i32
    %2 = arith.cmpi ne, %1, %c0_i32_0 : i32
    scf.if %2 {
      %cst_10 = arith.constant 0.000000e+00 : f32
      %12 = vector.broadcast %cst_10 : f32 to vector<16x32xf32>
      %c0_11 = arith.constant 0 : index
      %c0_12 = arith.constant 0 : index
      %13 = vector.load %arg7[%c0_11, %c0_12] : memref<16x32xf32, #tpu.memory_space<vmem>>, vector<16x32xf32>
      tpu.vector_store %arg7[%c0_11, %c0_12], %12 {strides = array<i32>} : memref<16x32xf32, #tpu.memory_space<vmem>>, vector<16x32xf32>,
    } else {
    }
    %c0 = arith.constant 0 : index
    %c0_1 = arith.constant 0 : index
    %3 = vector.load %arg7[%c0, %c0_1] : memref<16x32xf32, #tpu.memory_space<vmem>>, vector<16x32xf32>
    %c0_2 = arith.constant 0 : index
    %c0_3 = arith.constant 0 : index
    %4 = vector.load %arg3[%c0_2, %c0_3] : memref<16x32xbf16, #tpu.memory_space<vmem>>, vector<16x32xbf16>
    %c0_4 = arith.constant 0 : index
    %c0_5 = arith.constant 0 : index
    %5 = vector.load %arg4[%c0_4, %c0_5] : memref<32x32xbf16, #tpu.memory_space<vmem>>, vector<32x32xbf16>
    %cst = arith.constant dense<0.000000e+00> : vector<16x32xf32>
    %6 = tpu.matmul %4, %5, %cst {dimension_numbers = #tpu.dot_dimension_numbers<[1], [0], [0], [1], [0, 0, 1, 1], [], []>} : vector<16x32xbf16>, vector<32x32xbf16>, vector<16x32xf32> -> vector<16x32xf32>
    %7 = arith.addf %3, %6 : vector<16x32xf32>
    %c0_6 = arith.constant 0 : index
    %c0_7 = arith.constant 0 : index
    %8 = vector.load %arg7[%c0_6, %c0_7] : memref<16x32xf32, #tpu.memory_space<vmem>>, vector<16x32xf32>
    tpu.vector_store %arg7[%c0_6, %c0_7], %7 {strides = array<i32>} : memref<16x32xf32, #tpu.memory_space<vmem>>, vector<16x32xf32>,
    %c0_i32_8 = arith.constant 0 : i32
    %9 = arith.cmpi eq, %arg2, %c0_i32_8 : i32
    %10 = arith.extui %9 : i1 to i32
    %c0_i32_9 = arith.constant 0 : i32
    %11 = arith.cmpi ne, %10, %c0_i32_9 : i32
    scf.if %11 {
      %c0_10 = arith.constant 0 : index
      %c0_11 = arith.constant 0 : index
      %12 = vector.load %arg7[%c0_10, %c0_11] : memref<16x32xf32, #tpu.memory_space<vmem>>, vector<16x32xf32>
      %c0_12 = arith.constant 0 : index
      %c0_13 = arith.constant 0 : index
      %13 = vector.load %arg5[%c0_12, %c0_13] : memref<1x32xf32, #tpu.memory_space<vmem>>, vector<1x32xf32>
      %14 = vector.broadcast %13 : vector<1x32xf32> to vector<16x32xf32>
      %15 = arith.addf %12, %14 : vector<16x32xf32>
      %c0_14 = arith.constant 0 : index
      %c0_15 = arith.constant 0 : index
      %16 = vector.load %arg6[%c0_14, %c0_15] : memref<16x32xf32, #tpu.memory_space<vmem>>, vector<16x32xf32>
      tpu.vector_store %arg6[%c0_14, %c0_15], %15 {strides = array<i32>} : memref<16x32xf32, #tpu.memory_space<vmem>>, vector<16x32xf32>,
    } else {
    }
    return
  }
  func.func @transform_0(%arg0: i32, %arg1: i32, %arg2: i32) -> (i32, i32) {
    %c0_i32 = arith.constant 0 : i32
    return %arg0, %arg2 : i32, i32
  }
  func.func @transform_1(%arg0: i32, %arg1: i32, %arg2: i32) -> (i32, i32) {
    %c0_i32 = arith.constant 0 : i32
    return %arg2, %arg1 : i32, i32
  }
  func.func @transform_2(%arg0: i32, %arg1: i32, %arg2: i32) -> (i32, i32) {
    %c0_i32 = arith.constant 0 : i32
    %c0_i32_0 = arith.constant 0 : i32
    return %c0_i32, %arg1 : i32, i32
  }
  func.func @transform_3(%arg0: i32, %arg1: i32, %arg2: i32) -> (i32, i32) {
    %c0_i32 = arith.constant 0 : i32
    return %arg0, %arg1 : i32, i32
  }
}

</mosaic_0001>

<bundles_post_ra>
// kernel: attention_forward.3
= control target key start
LH: loop header
LB: loop body
LE: loop exit
PB: predicated region body
PF: predicated region fallthrough
CT: control target
= control target key end

     0   :  { %vm19_vm0 = vcmask 785408   ;;  %v108_v1 = vmov 0.0   ;;  %vm47_vm1 = vcmask 261120   ;;  %vm83_vm2 = vcmask 781312   ;;  %s151_s1 = inlined_call_operand.vmem [shape: bf16[32,96], index: 1, kind: input, shape index: {}]   ;;  %s152_s2 = inlined_call_operand.vmem [shape: f32[1,96], index: 2, kind: input, shape index: {}]   ;;  %s153_s0 = inlined_call_operand.vmem [shape: bf16[16,32], index: 0, kind: input, shape index: {}]   ;;  %s154_s3 = inlined_call_operand.vmem [shape: bf16[16,96], index: 3, kind: output, shape index: {}]  }
   0x1   :  { %v105_v0 = vld [vmem:[%s151_s1 + $0x8] sm:$0xff]  ;;  %20 = vst.msk [vmem:[#allocation2] sm:$0xff] %vm19_vm0, %v108_v1  ;;  %v104_v2 = vld [vmem:[%s151_s1] sm:$0xff] }
   0x2   :  { %21 = vst.msk [vmem:[#allocation2 + $0x8] sm:$0xff] %vm19_vm0, %v108_v1  ;;  %57 = vmatpush.bf16.msra.mxu0 %v105_v0  ;;  %v103_v3 = vld [vmem:[%s153_s0] sm:$0xff] }
   0x3   :  { %v107_v8 = vld [vmem:[%s152_s2] ss:$0 sm:$0xff] }
   0x6   :  { %58 = vmatpush.bf16.msra.mxu0 %v104_v2 }
   0x8   :  { %v22_v4 = vld [vmem:[#allocation2] sm:$0xff] }
   0x9   :  { %102 = vmatmul.msk.bf16.vlgmr.msra.gmra.mxu0 %vm47_vm1, %v103_v3  ;;  %v23_v7 = vld [vmem:[#allocation2 + $0x8] sm:$0xff] }
  0x86   :  { %v60_v5 = vpop.f32.mrf.mxu0 }
  0x87   :  { %v65_v6 = vadd.f32 %v60_v5, %v22_v4 }
  0x89   :  { %68 = vst.msk [vmem:[#allocation2] sm:$0xff] %vm19_vm0, %v65_v6 }
  0x8e   :  { %v62_v9 = vpop.f32.mrf.mxu0 }
  0x8f   :  { %v66_v10 = vadd.f32 %v62_v9, %v23_v7 }
  0x90   :  { %v73_v11 = vld [vmem:[#allocation2] sm:$0xff] }
  0x91   :  { %v79_v12 = vadd.f32 %v107_v8, %v73_v11  ;;  %69 = vst.msk [vmem:[#allocation2 + $0x8] sm:$0xff] %vm19_vm0, %v66_v10 }
  0x93   :  { %v81_v13 = vpack.c.bf16 %v79_v12, %v79_v12 }
  0x95   :  { %84 = vst.msk [vmem:[%s154_s3] sm:$0xf] %vm83_vm2, %v81_v13 }
  0x98   :  { %v74_v14 = vld [vmem:[#allocation2 + $0x8] sm:$0xff] }
  0x99   :  { %v80_v15 = vadd.f32 %v107_v8, %v74_v14 }
  0x9b   :  { %v82_v16 = vpack.c.bf16 %v80_v15, %v80_v15 }
  0x9d   :  { %85 = vst.msk [vmem:[%s154_s3 + $0x4] sm:$0xf] %vm83_vm2, %v82_v16 }

// kernel: attention_forward.5
= control target key start
LH: loop header
LB: loop body
LE: loop exit
PB: predicated region body
PF: predicated region fallthrough
CT: control target
= control target key end

     0   :  { %vm20_vm0 = vcmask 261120   ;;  %v148_v1 = vmov 0.0   ;;  %s194_s0 = inlined_call_operand.vmem [shape: bf16[16,32], index: 0, kind: input, shape index: {}]   ;;  %s195_s1 = inlined_call_operand.vmem [shape: bf16[32,32], index: 1, kind: input, shape index: {}]   ;;  %s196_s2 = inlined_call_operand.vmem [shape: f32[1,32], index: 2, kind: input, shape index: {}]   ;;  %s197_s3 = inlined_call_operand.hbm [shape: f32[16,32], index: 3, kind: output, shape index: {}]  }
   0x1   :  { %v116_v0 = vld [vmem:[%s195_s1 + $0x8] sm:$0xff]  ;;  %21 = vst.msk [vmem:[#allocation2] sm:$0xff] %vm20_vm0, %v148_v1 }
   0x2   :  { %8 = vsyncpa [#allocation4], 0  ;;  %58 = vmatpush.bf16.msra.mxu0 %v116_v0  ;;  %v115_v2 = vld [vmem:[%s195_s1] sm:$0xff]  ;;  %22 = vst.msk [vmem:[#allocation2 + $0x8] sm:$0xff] %vm20_vm0, %v148_v1  ;;  %s89_s22 = sshll.u32 %s197_s3, 4  ;;  %s151_s23 = smov 8   ;;  %s90_s22 = int_to_ptr.hbm [resolvable:$true] %s89_s22 }
   0x3   :  { %v114_v3 = vld [vmem:[%s194_s0] sm:$0xff]  ;;  %s149_s0 = smov [#allocation3]  }
   0x4   :  { %v121_v8 = vld [vmem:[%s196_s2] ss:$0 sm:$0xff]  ;;  %s87_s1 = sshll.u32 %s149_s0, 4  ;;  %s150_s2 = smov 128   ;;  %s88_s1 = int_to_ptr.vmem [resolvable:$true] %s87_s1 }
   0x6   :  { %59 = vmatpush.bf16.msra.mxu0 %v115_v2 }
   0x8   :  { %v23_v4 = vld [vmem:[#allocation2] sm:$0xff] }
   0x9   :  { %113 = vmatmul.msk.bf16.vlgmr.msra.gmra.mxu0 %vm20_vm0, %v114_v3  ;;  %v24_v7 = vld [vmem:[#allocation2 + $0x8] sm:$0xff] }
  0x86   :  { %v61_v5 = vpop.f32.mrf.mxu0 }
  0x87   :  { %v66_v6 = vadd.f32 %v61_v5, %v23_v4 }
  0x89   :  { %68 = vst.msk [vmem:[#allocation2] sm:$0xff] %vm20_vm0, %v66_v6 }
  0x8e   :  { %v63_v9 = vpop.f32.mrf.mxu0 }
  0x8f   :  { %v67_v10 = vadd.f32 %v63_v9, %v24_v7 }
  0x90   :  { %v73_v11 = vld [vmem:[#allocation2] sm:$0xff] }
  0x91   :  { %69 = vst.msk [vmem:[#allocation2 + $0x8] sm:$0xff] %vm20_vm0, %v67_v10  ;;  %v79_v12 = vadd.f32 %v121_v8, %v73_v11 }
  0x93   :  { %81 = vst.msk [vmem:[#allocation3] sm:$0xff] %vm20_vm0, %v79_v12 }
  0x98   :  { %v74_v13 = vld [vmem:[#allocation2 + $0x8] sm:$0xff] }
  0x99   :  { %v80_v14 = vadd.f32 %v121_v8, %v74_v13 }
  0x9b   :  { %82 = vst.msk [vmem:[#allocation3 + $0x8] sm:$0xff] %vm20_vm0, %v80_v14 }
  0x9c   :  { %95 = dma.vmem_to_hbm [thread:$0]  %s88_s1, 256, %s90_s22, [#allocation4], %s150_s2, %s150_s2, %s151_s23  }
  0x9d   :  { %146 = dma.done.wait [#allocation4], 256  }
  0x9e   :  { %147 = vsyncadd [#allocation4], 4294967040 }
  0x9f   :  { %100 = vsyncpa [#allocation4], 1 }

// kernel: attention_forward.4
= control target key start
LH: loop header
LB: loop body
LE: loop exit
PB: predicated region body
PF: predicated region fallthrough
CT: control target
= control target key end

     0   :  { %10 = vsyncpa [#allocation8], 0  ;;  %s2618_s0 = inlined_call_operand.vmem [shape: bf16[2,8,3,4,8], index: 0, kind: input, shape index: {}, may-alias: {0,1,2}]   ;;  %s2619_s1 = inlined_call_operand.vmem [shape: bf16[2,8,3,4,8], index: 1, kind: input, shape index: {}, may-alias: {0,1,2}]   ;;  %s2620_s2 = inlined_call_operand.vmem [shape: bf16[2,8,3,4,8], index: 2, kind: input, shape index: {}, may-alias: {0,1,2}]   ;;  %s2621_s3 = inlined_call_operand.vmem [shape: bf16[2,8,32], index: 3, kind: output, shape index: {0}]   ;;  %s2622_s4 = inlined_call_operand.hbm [shape: f32[2,4,8,8], index: 4, kind: output, shape index: {1}]  }
   0x1   :  { %12 = vsyncpa [#allocation8 + $0x1], 0  ;;  %s2031_s15 = smov 0   ;;  %s2033_s16 = smov 0  }
   0x2   :  { %s2035_s17 = smov 0   ;;  %s2037_s18 = smov 0  }
   0x3   :  { %s2039_s19 = smov 0   ;;  %s2041_s20 = smov 0  }
   0x4 LB: > { %s1797_s21 = sadd.s32 4294967295, %s2000_s20   ;;  %s1798_s22 = sadd.s32 4294967294, %s2000_s20   ;;  %s2000_s20 = sphi %s2041_s20, %s18_s20   ;;  %s1996_s19 = sphi %s2039_s19, %s2652_s19   ;;  %s1992_s18 = sphi %s2037_s18, %s2651_s18   ;;  %s1988_s17 = sphi %s2035_s17, %s2650_s17   ;;  %s1984_s16 = sphi %s2033_s16, %s2649_s16   ;;  %s1980_s15 = sphi %s2031_s15, %s2648_s15  }
   0x5   : > { %s30_s23 = sadd.s32 1, %s1996_s19  ;;  %s39_s24 = sadd.s32 1, %s1988_s17 }
   0x6   : > { %p32_p0 = scmp.ge.s32.totalorder %s30_s23, 2  ;;  %p46_p1 = scmp.ne.s32.totalorder %s1988_s17, %s1984_s16 }
   0x7   : > { %p47_p2 = scmp.eq.s32.totalorder %s2000_s20, 0  ;;  %p158_p3 = scmp.eq.s32.totalorder %s1797_s21, 1 }
   0x8   : > { %s2654_s23 = smov (%p32_p0, %s30_s23), 0  ;;  %p163_p6 = scmp.ne.s32.totalorder %s1984_s16, %s1980_s15 }
   0x9   : > { %p2070_p4 = por %p47_p2, %p46_p1  ;;  %p2074_p5 = por %p158_p3, %p46_p1 }
   0xa   : > { %s34_s27 = ssub.s32 %s1996_s19, %s2654_s23  ;;  %p164_p8 = scmp.eq.s32.totalorder %s1798_s22, 1 }
   0xb   : > { %p37_p7 = scmp.eq.s32.totalorder %s34_s27, 0  ;;  %p1800_p10 = scmp.ge.s32.totalorder %s2000_s20, 2 }
   0xc   : > { %p2085_p9 = por %p164_p8, %p163_p6 }
   0xd   : > { %s2083_s28 = scalar_select %p37_p7, %s1988_s17, %s39_s24  }
   0xe   : > { %180 = sbr.rel (%p1800_p10) target bundleno = 58 (0x3a), region = 16 }
  0x13   : > { %183 = sbr.rel (!%p2070_p4) target bundleno = 32 (0x20), region = 20  ;;  %s185_s30 = sand.u32 (%p2070_p4), 1, %s1988_s17  }
  0x14   : > { %s1846_s5 = smul.u32 (%p2070_p4), 48, %s1996_s19  ;;  %s1801_s6 = sshll.u32 (%p2070_p4), %s185_s30, 4 }
  0x15   : > { %s187_s10 = scalar_lea.vmem (%p2070_p4), [#allocation4], %s1801_s6 }
  0x16   : > { %s193_s9 = scalar_lea.vmem (%p2070_p4), %s2618_s0, %s1846_s5 }
  0x17   : > { %v210_v0 = vld [vmem:[%s193_s9] sm:$0x3] (%p2070_p4)  ;;  %v212_v1 = vld [vmem:[%s193_s9 + $0x6] sm:$0x3] (%p2070_p4)  ;;  %v214_v2 = vld [vmem:[%s193_s9 + $0xc] sm:$0x3] (%p2070_p4) }
  0x18   : > { %211 = vst [vmem:[%s187_s10] sm:$0x3] %v210_v0  ;;  %v216_v3 = vld [vmem:[%s193_s9 + $0x12] sm:$0x3]  ;;  %v218_v4 = vld [vmem:[%s193_s9 + $0x18] sm:$0x3] }
  0x19   : > { %213 = vst [vmem:[%s187_s10 + $0x2] sm:$0x3] %v212_v1  ;;  %v220_v5 = vld [vmem:[%s193_s9 + $0x1e] sm:$0x3]  ;;  %v222_v6 = vld [vmem:[%s193_s9 + $0x24] sm:$0x3] }
  0x1a   : > { %215 = vst [vmem:[%s187_s10 + $0x4] sm:$0x3] %v214_v2  ;;  %v224_v7 = vld [vmem:[%s193_s9 + $0x2a] sm:$0x3] }
  0x1b   : > { %217 = vst [vmem:[%s187_s10 + $0x6] sm:$0x3] %v216_v3 }
  0x1c   : > { %219 = vst [vmem:[%s187_s10 + $0x8] sm:$0x3] %v218_v4 }
  0x1d   : > { %221 = vst [vmem:[%s187_s10 + $0xa] sm:$0x3] %v220_v5 }
  0x1e   : > { %223 = vst [vmem:[%s187_s10 + $0xc] sm:$0x3] %v222_v6 }
  0x1f   : > { %225 = vst [vmem:[%s187_s10 + $0xe] sm:$0x3] %v224_v7 }
  0x20 PF: > { %265 = sbr.rel (!%p2070_p4) target bundleno = 45 (0x2d), region = 61  ;;  %s267_s11 = sand.u32 (%p2070_p4), 1, %s1988_s17  }
  0x21   : > { %s1804_s12 = smul.u32 (%p2070_p4), 48, %s1996_s19  ;;  %s1803_s13 = sshll.u32 (%p2070_p4), %s267_s11, 4 }
  0x22   : > { %s269_s24 = scalar_lea.vmem (%p2070_p4), [#allocation5], %s1803_s13 }
  0x23   : > { %s1690_s22 = scalar_lea.vmem (%p2070_p4), %s2619_s1, %s1804_s12 }
  0x24   : > { %v1805_v8 = vld [vmem:[%s1690_s22 + $0x2] sm:$0x3] (%p2070_p4)  ;;  %v1806_v9 = vld [vmem:[%s1690_s22 + $0x8] sm:$0x3] (%p2070_p4)  ;;  %v1807_v10 = vld [vmem:[%s1690_s22 + $0xe] sm:$0x3] (%p2070_p4) }
  0x25   : > { %291 = vst [vmem:[%s269_s24] sm:$0x3] %v1805_v8  ;;  %v1808_v11 = vld [vmem:[%s1690_s22 + $0x14] sm:$0x3]  ;;  %v1809_v12 = vld [vmem:[%s1690_s22 + $0x1a] sm:$0x3] }
  0x26   : > { %293 = vst [vmem:[%s269_s24 + $0x2] sm:$0x3] %v1806_v9  ;;  %v1810_v13 = vld [vmem:[%s1690_s22 + $0x20] sm:$0x3]  ;;  %v1811_v14 = vld [vmem:[%s1690_s22 + $0x26] sm:$0x3] }
  0x27   : > { %295 = vst [vmem:[%s269_s24 + $0x4] sm:$0x3] %v1807_v10  ;;  %v1812_v15 = vld [vmem:[%s1690_s22 + $0x2c] sm:$0x3] }
  0x28   : > { %297 = vst [vmem:[%s269_s24 + $0x6] sm:$0x3] %v1808_v11 }
  0x29   : > { %299 = vst [vmem:[%s269_s24 + $0x8] sm:$0x3] %v1809_v12 }
  0x2a   : > { %301 = vst [vmem:[%s269_s24 + $0xa] sm:$0x3] %v1810_v13 }
  0x2b   : > { %303 = vst [vmem:[%s269_s24 + $0xc] sm:$0x3] %v1811_v14 }
  0x2c   : > { %305 = vst [vmem:[%s269_s24 + $0xe] sm:$0x3] %v1812_v15 }
  0x2d PF: > { %345 = sbr.rel (!%p2070_p4) target bundleno = 58 (0x3a), region = 102  ;;  %s347_s27 = sand.u32 (%p2070_p4), 1, %s1988_s17  }
  0x2e   : > { %s1814_s30 = smul.u32 (%p2070_p4), 48, %s1996_s19  ;;  %s1813_s5 = sshll.u32 (%p2070_p4), %s347_s27, 4 }
  0x2f   : > { %s349_s9 = scalar_lea.vmem (%p2070_p4), [#allocation6], %s1813_s5 }
  0x30   : > { %s1696_s8 = scalar_lea.vmem (%p2070_p4), %s2620_s2, %s1814_s30 }
  0x31   : > { %v1815_v16 = vld [vmem:[%s1696_s8 + $0x4] sm:$0x3] (%p2070_p4)  ;;  %v1816_v17 = vld [vmem:[%s1696_s8 + $0xa] sm:$0x3] (%p2070_p4)  ;;  %v1817_v18 = vld [vmem:[%s1696_s8 + $0x10] sm:$0x3] (%p2070_p4) }
  0x32   : > { %371 = vst [vmem:[%s349_s9] sm:$0x3] %v1815_v16  ;;  %v1818_v19 = vld [vmem:[%s1696_s8 + $0x16] sm:$0x3]  ;;  %v1819_v20 = vld [vmem:[%s1696_s8 + $0x1c] sm:$0x3] }
  0x33   : > { %373 = vst [vmem:[%s349_s9 + $0x2] sm:$0x3] %v1816_v17  ;;  %v1820_v21 = vld [vmem:[%s1696_s8 + $0x22] sm:$0x3]  ;;  %v1821_v22 = vld [vmem:[%s1696_s8 + $0x28] sm:$0x3] }
  0x34   : > { %375 = vst [vmem:[%s349_s9 + $0x4] sm:$0x3] %v1817_v18  ;;  %v1822_v23 = vld [vmem:[%s1696_s8 + $0x2e] sm:$0x3] }
  0x35   : > { %377 = vst [vmem:[%s349_s9 + $0x6] sm:$0x3] %v1818_v19 }
  0x36   : > { %379 = vst [vmem:[%s349_s9 + $0x8] sm:$0x3] %v1819_v20 }
  0x37   : > { %381 = vst [vmem:[%s349_s9 + $0xa] sm:$0x3] %v1820_v21 }
  0x38   : > { %383 = vst [vmem:[%s349_s9 + $0xc] sm:$0x3] %v1821_v22 }
  0x39   : > { %385 = vst [vmem:[%s349_s9 + $0xe] sm:$0x3] %v1822_v23 }
  0x3a PF: > { %p1823_p11 = scmp.ge.s32.totalorder %s2000_s20, 1  ;;  %p424_p12 = scmp.lt.s32.totalorder %s2000_s20, 3 }
  0x3c   : > { %p425_p13 = pnand %p1823_p11, %p424_p12 }
  0x3e   : > { %428 = sbr.rel (%p425_p13) target bundleno = 1299 (0x513), region = 143 }
  0x43   : > { %s2116_s25 = sand.u32 1, %s1984_s16   ;;  %vm550_vm0 = vcmask 1041409   ;;  %vm553_vm1 = vcmask 1042434   ;;  %vm556_vm2 = vcmask 1043459   ;;  %vm559_vm3 = vcmask 1044484   ;;  %p486_p0 = scmp.lt.s32.totalorder %s1992_s18, 1 }
  0x44   : > { %s2119_s10 = sshll.u32 %s2116_s25, 4  ;;  %vm562_vm4 = vcmask 1045509   ;;  %vm565_vm5 = vcmask 1046534   ;;  %vm568_vm6 = vcmask 1047559   ;;  %vm572_vm7 = vcmask 60416   ;;  %s1827_s14 = sshll.u32 %s2116_s25, 5 }
  0x45   : > { %s2122_s11 = scalar_lea.vmem [#allocation5], %s2119_s10  ;;  %s2134_s12 = scalar_lea.vmem [#allocation6], %s2119_s10  ;;  %vm1128_vm8 = vcmask 64512   ;;  %vm1178_vm9 = vcmask 1043456  }
  0x46   : > { %v498_v24 = vld [vmem:[%s2122_s11] sm:$0x1]  ;;  %v499_v25 = vld [vmem:[%s2122_s11 + $0x2] sm:$0x1]  ;;  %v500_v26 = vld [vmem:[%s2122_s11 + $0x4] sm:$0x1] }
  0x47   : > { %v501_v27 = vld [vmem:[%s2122_s11 + $0x6] sm:$0x1]  ;;  %507 = vst [vmem:[#allocation1] ss:$2 sm:$0xff] %v498_v24  ;;  %v502_v28 = vld [vmem:[%s2122_s11 + $0x8] sm:$0x1] }
  0x48   : > { %512 = vst [vmem:[#allocation1 + $0x10] ss:$2 sm:$0xff] %v499_v25  ;;  %v503_v29 = vld [vmem:[%s2122_s11 + $0xa] sm:$0x1]  ;;  %v504_v30 = vld [vmem:[%s2122_s11 + $0xc] sm:$0x1] }
  0x49   : > { %517 = vst [vmem:[#allocation1 + $0x20] ss:$2 sm:$0xff] %v500_v26  ;;  %v505_v31 = vld [vmem:[%s2122_s11 + $0xe] sm:$0x1]  ;;  %v574_v44 = vld [vmem:[%s2134_s12] sm:$0x1] }
  0x4a   : > { %522 = vst [vmem:[#allocation1 + $0x30] ss:$2 sm:$0xff] %v501_v27  ;;  %v575_v46 = vld [vmem:[%s2134_s12 + $0x2] sm:$0x1]  ;;  %v576_v47 = vld [vmem:[%s2134_s12 + $0x4] sm:$0x1] }
  0x4b   : > { %v577_v49 = vld [vmem:[%s2134_s12 + $0x6] sm:$0x1]  ;;  %v578_v0 = vld [vmem:[%s2134_s12 + $0x8] sm:$0x1]  ;;  %v579_v2 = vld [vmem:[%s2134_s12 + $0xa] sm:$0x1] }
  0x4c   : > { %v581_v3 = vld [vmem:[%s2134_s12 + $0xe] sm:$0x1]  ;;  %v580_v5 = vld [vmem:[%s2134_s12 + $0xc] sm:$0x1]  ;;  %v642_v11 = vld [vmem:[%s2122_s11] sm:$0x1] }
  0x4d   : > { %v643_v12 = vld [vmem:[%s2122_s11 + $0x2] sm:$0x1]  ;;  %v645_v13 = vld [vmem:[%s2122_s11 + $0x6] sm:$0x1]  ;;  %v644_v17 = vld [vmem:[%s2122_s11 + $0x4] sm:$0x1] }
  0x4e   : > { %v508_v32 = vld.sshfl [vmem:[#allocation1] sm:$0xff pattern:$0x75643120]  ;;  %s2305_s13 = scalar_lea.vmem [#allocation4], %s2119_s10  ;;  %s2484_s21 = scalar_lea.vmem [#allocation7], %s1827_s14 }
  0x4f   : > { %v513_v33 = vld.sshfl [vmem:[#allocation1 + $0x10] sm:$0xff pattern:$0x75643120]  ;;  %526 = vst [vmem:[#allocation1] ss:$2 sm:$0xff] %v502_v28  ;;  %v541_v35 = vunpack.c.l.b16 %v508_v32  ;;  %s487_s22 = scalar_select %p486_p0, %s1992_s18, 1 }
  0x50   : > { %v518_v34 = vld.sshfl [vmem:[#allocation1 + $0x20] sm:$0xff pattern:$0x75643120]  ;;  %530 = vst [vmem:[#allocation1 + $0x10] ss:$2 sm:$0xff] %v503_v29  ;;  %v542_v36 = vunpack.c.l.b16 %v513_v33  ;;  %s2623_s6 = smov 8  }
  0x51   : > { %v523_v37 = vld.sshfl [vmem:[#allocation1 + $0x30] sm:$0xff pattern:$0x75643120]  ;;  %534 = vst [vmem:[#allocation1 + $0x20] ss:$2 sm:$0xff] %v504_v30  ;;  %v543_v38 = vunpack.c.l.b16 %v518_v34  ;;  %s1828_s24 = sshll.u32 %s487_s22, 2 }
  0x52   : > { %538 = vst [vmem:[#allocation1 + $0x30] ss:$2 sm:$0xff] %v505_v31  ;;  %v544_v39 = vunpack.c.l.b16 %v523_v37  ;;  %v549_v40 = vrot.slane %v542_v36, 7  ;;  %v646_v21 = vld [vmem:[%s2122_s11 + $0x8] sm:$0x1]  ;;  %s2522_s5 = scalar_lea.vmem %s2621_s3, %s1828_s24  ;;  %s2003_s7 = smov 24  }
  0x53   : > { %v552_v41 = vrot.slane %v543_v38, 6  ;;  %v647_v22 = vld [vmem:[%s2122_s11 + $0xa] sm:$0x1]  ;;  %v649_v23 = vld [vmem:[%s2122_s11 + $0xe] sm:$0x1]  ;;  %s1845_s8 = sshll.u32 %s1992_s18, 5 }
  0x54   : > { %v551_v42 = vsel %vm550_vm0, %v549_v40, %v541_v35  ;;  %v555_v43 = vrot.slane %v544_v39, 5  ;;  %v648_v27 = vld [vmem:[%s2122_s11 + $0xc] sm:$0x1]  ;;  %v711_v29 = vld [vmem:[%s2134_s12] sm:$0x1]  ;;  %s1626_s14 = scalar_lea.sflag [#allocation8], %s2116_s25 }
  0x55   : > { %v554_v45 = vsel %vm553_vm1, %v552_v41, %v551_v42  ;;  %v712_v30 = vld [vmem:[%s2134_s12 + $0x2] sm:$0x1]  ;;  %v714_v31 = vld [vmem:[%s2134_s12 + $0x6] sm:$0x1]  ;;  %v713_v35 = vld [vmem:[%s2134_s12 + $0x4] sm:$0x1] }
  0x56   : > { %v527_v48 = vld.sshfl [vmem:[#allocation1] sm:$0xff pattern:$0x75643120]  ;;  %v557_v54 = vsel %vm556_vm2, %v555_v43, %v554_v45  ;;  %v780_v45 = vld [vmem:[%s2122_s11] sm:$0x2]  ;;  %s1942_s18 = scalar_lea.hbm %s2622_s4, 64 }
  0x57   : > { %v531_v50 = vld.sshfl [vmem:[#allocation1 + $0x10] sm:$0xff pattern:$0x75643120]  ;;  %v545_v51 = vunpack.c.l.b16 %v527_v48  ;;  %583 = vst [vmem:[#allocation1] ss:$2 sm:$0xff] %v574_v44 }
  0x58   : > { %v535_v52 = vld.sshfl [vmem:[#allocation1 + $0x20] sm:$0xff pattern:$0x75643120]  ;;  %v546_v53 = vunpack.c.l.b16 %v531_v50  ;;  %588 = vst [vmem:[#allocation1 + $0x10] ss:$2 sm:$0xff] %v575_v46 }
  0x59   : > { %v539_v55 = vld.sshfl [vmem:[#allocation1 + $0x30] sm:$0xff pattern:$0x75643120]  ;;  %v547_v56 = vunpack.c.l.b16 %v535_v52  ;;  %v558_v57 = vrot.slane %v545_v51, 4  ;;  %593 = vst [vmem:[#allocation1 + $0x20] ss:$2 sm:$0xff] %v576_v47 }
  0x5a   : > { %v548_v58 = vunpack.c.l.b16 %v539_v55  ;;  %v561_v59 = vrot.slane %v546_v53, 3  ;;  %598 = vst [vmem:[#allocation1 + $0x30] ss:$2 sm:$0xff] %v577_v49  ;;  %v715_v37 = vld [vmem:[%s2134_s12 + $0x8] sm:$0x1] }
  0x5b   : > { %v560_v60 = vsel %vm559_vm3, %v558_v57, %v557_v54  ;;  %v564_v61 = vrot.slane %v547_v56, 2  ;;  %v716_v38 = vld [vmem:[%s2134_s12 + $0xa] sm:$0x1]  ;;  %v718_v39 = vld [vmem:[%s2134_s12 + $0xe] sm:$0x1] }
  0x5c   : > { %v563_v62 = vsel %vm562_vm4, %v561_v59, %v560_v60  ;;  %v567_v63 = vrot.slane %v548_v58, 1  ;;  %v717_v43 = vld [vmem:[%s2134_s12 + $0xc] sm:$0x1]  ;;  %v781_v46 = vld [vmem:[%s2122_s11 + $0x2] sm:$0x2] }
  0x5d   : > { %v566_v1 = vsel %vm565_vm5, %v564_v61, %v563_v62  ;;  %v783_v47 = vld [vmem:[%s2122_s11 + $0x6] sm:$0x2]  ;;  %v782_v51 = vld [vmem:[%s2122_s11 + $0x4] sm:$0x2]  ;;  %v784_v53 = vld [vmem:[%s2122_s11 + $0x8] sm:$0x2] }
  0x5e   : > { %v569_v4 = vsel %vm568_vm6, %v567_v63, %v566_v1  ;;  %v2150_v6 = vld.sshfl [vmem:[#allocation1] sm:$0xff pattern:$0x75643120]  ;;  %v849_v61 = vld [vmem:[%s2134_s12] sm:$0x2] }
  0x5f   : > { %v570_v7 = vpack.c.b16 %v569_v4, %v569_v4  ;;  %v2152_v8 = vld.sshfl [vmem:[#allocation1 + $0x10] sm:$0xff pattern:$0x75643120]  ;;  %602 = vst [vmem:[#allocation1] ss:$2 sm:$0xff] %v578_v0 }
  0x60   : > { %606 = vst [vmem:[#allocation1 + $0x10] ss:$2 sm:$0xff] %v579_v2  ;;  %v2154_v9 = vld.sshfl [vmem:[#allocation1 + $0x20] sm:$0xff pattern:$0x75643120] }
  0x61   : > { %573 = vst.msk [vmem:[#allocation2] sm:$0xf] %vm572_vm7, %v570_v7  ;;  %v2157_v10 = vld.sshfl [vmem:[#allocation1 + $0x30] sm:$0xff pattern:$0x75643120] }
  0x62   : > { %614 = vst [vmem:[#allocation1 + $0x30] ss:$2 sm:$0xff] %v581_v3  ;;  %v785_v54 = vld [vmem:[%s2122_s11 + $0xa] sm:$0x2]  ;;  %v787_v55 = vld [vmem:[%s2122_s11 + $0xe] sm:$0x2] }
  0x63   : > { %610 = vst [vmem:[#allocation1 + $0x20] ss:$2 sm:$0xff] %v580_v5  ;;  %v786_v58 = vld [vmem:[%s2122_s11 + $0xc] sm:$0x2]  ;;  %v850_v62 = vld [vmem:[%s2134_s12 + $0x2] sm:$0x2] }
  0x64   : > { %v852_v0 = vld [vmem:[%s2134_s12 + $0x6] sm:$0x2]  ;;  %v851_v3 = vld [vmem:[%s2134_s12 + $0x4] sm:$0x2]  ;;  %v853_v5 = vld [vmem:[%s2134_s12 + $0x8] sm:$0x2] }
  0x65   : > { %v854_v7 = vld [vmem:[%s2134_s12 + $0xa] sm:$0x2] }
  0x66   : > { %v2162_v14 = vld.sshfl [vmem:[#allocation1] sm:$0xff pattern:$0x75643120] }
  0x67   : > { %v2164_v15 = vld.sshfl [vmem:[#allocation1 + $0x10] sm:$0xff pattern:$0x75643120]  ;;  %651 = vst [vmem:[#allocation1] ss:$2 sm:$0xff] %v642_v11 }
  0x68   : > { %656 = vst [vmem:[#allocation1 + $0x10] ss:$2 sm:$0xff] %v643_v12  ;;  %v1064_v18 = vld [vmem:[#allocation2] sm:$0xf]  ;;  %v856_v11 = vld [vmem:[%s2134_s12 + $0xe] sm:$0x2] }
  0x69   : > { %v2166_v16 = vld.sshfl [vmem:[#allocation1 + $0x30] sm:$0xff pattern:$0x75643120]  ;;  %v1133_v19 = vsel %vm1128_vm8, %v1064_v18, 0 }
  0x6a   : > { %666 = vst [vmem:[#allocation1 + $0x30] ss:$2 sm:$0xff] %v645_v13  ;;  %v2170_v20 = vld.sshfl [vmem:[#allocation1 + $0x20] sm:$0xff pattern:$0x75643120]  ;;  %1142 = vmatpush.bf16.xpose.msra.mxu0 %v1133_v19 }
  0x6b   : > { %661 = vst [vmem:[#allocation1 + $0x20] ss:$2 sm:$0xff] %v644_v17  ;;  %v855_v17 = vld [vmem:[%s2134_s12 + $0xc] sm:$0x2] }
  0x6e   : > { %v2175_v24 = vld.sshfl [vmem:[#allocation1] sm:$0xff pattern:$0x75643120] }
  0x6f   : > { %v2177_v25 = vld.sshfl [vmem:[#allocation1 + $0x10] sm:$0xff pattern:$0x75643120]  ;;  %670 = vst [vmem:[#allocation1] ss:$2 sm:$0xff] %v646_v21 }
  0x70   : > { %674 = vst [vmem:[#allocation1 + $0x10] ss:$2 sm:$0xff] %v647_v22  ;;  %v918_v21 = vld [vmem:[%s2122_s11] sm:$0x2]  ;;  %v919_v22 = vld [vmem:[%s2122_s11 + $0x2] sm:$0x2] }
  0x71   : > { %v2179_v26 = vld.sshfl [vmem:[#allocation1 + $0x30] sm:$0xff pattern:$0x75643120] }
  0x72   : > { %682 = vst [vmem:[#allocation1 + $0x30] ss:$2 sm:$0xff] %v649_v23  ;;  %v2182_v28 = vld.sshfl [vmem:[#allocation1 + $0x20] sm:$0xff pattern:$0x75643120] }
  0x73   : > { %678 = vst [vmem:[#allocation1 + $0x20] ss:$2 sm:$0xff] %v648_v27  ;;  %v921_v27 = vld [vmem:[%s2122_s11 + $0x6] sm:$0x2] }
  0x76   : > { %v2187_v32 = vld.sshfl [vmem:[#allocation1] sm:$0xff pattern:$0x75643120] }
  0x77   : > { %v2189_v33 = vld.sshfl [vmem:[#allocation1 + $0x10] sm:$0xff pattern:$0x75643120]  ;;  %720 = vst [vmem:[#allocation1] ss:$2 sm:$0xff] %v711_v29 }
  0x78   : > { %725 = vst [vmem:[#allocation1 + $0x10] ss:$2 sm:$0xff] %v712_v30 }
  0x79   : > { %v2191_v34 = vld.sshfl [vmem:[#allocation1 + $0x30] sm:$0xff pattern:$0x75643120] }
  0x7a   : > { %735 = vst [vmem:[#allocation1 + $0x30] ss:$2 sm:$0xff] %v714_v31  ;;  %v2194_v36 = vld.sshfl [vmem:[#allocation1 + $0x20] sm:$0xff pattern:$0x75643120] }
  0x7b   : > { %730 = vst [vmem:[#allocation1 + $0x20] ss:$2 sm:$0xff] %v713_v35  ;;  %v920_v31 = vld [vmem:[%s2122_s11 + $0x4] sm:$0x2] }
  0x7e   : > { %v2199_v40 = vld.sshfl [vmem:[#allocation1] sm:$0xff pattern:$0x75643120] }
  0x7f   : > { %v2201_v41 = vld.sshfl [vmem:[#allocation1 + $0x10] sm:$0xff pattern:$0x75643120]  ;;  %739 = vst [vmem:[#allocation1] ss:$2 sm:$0xff] %v715_v37 }
  0x80   : > { %743 = vst [vmem:[#allocation1 + $0x10] ss:$2 sm:$0xff] %v716_v38  ;;  %v922_v37 = vld [vmem:[%s2122_s11 + $0x8] sm:$0x2]  ;;  %v923_v38 = vld [vmem:[%s2122_s11 + $0xa] sm:$0x2] }
  0x81   : > { %v2203_v42 = vld.sshfl [vmem:[#allocation1 + $0x30] sm:$0xff pattern:$0x75643120] }
  0x82   : > { %751 = vst [vmem:[#allocation1 + $0x30] ss:$2 sm:$0xff] %v718_v39  ;;  %v2206_v44 = vld.sshfl [vmem:[#allocation1 + $0x20] sm:$0xff pattern:$0x75643120] }
  0x83   : > { %747 = vst [vmem:[#allocation1 + $0x20] ss:$2 sm:$0xff] %v717_v43  ;;  %v925_v39 = vld [vmem:[%s2122_s11 + $0xe] sm:$0x2] }
  0x86   : > { %v2211_v48 = vld.sshfl [vmem:[#allocation1] sm:$0xff pattern:$0x75643120] }
  0x87   : > { %v2213_v49 = vld.sshfl [vmem:[#allocation1 + $0x10] sm:$0xff pattern:$0x75643120]  ;;  %789 = vst [vmem:[#allocation1] ss:$2 sm:$0xff] %v780_v45 }
  0x88   : > { %794 = vst [vmem:[#allocation1 + $0x10] ss:$2 sm:$0xff] %v781_v46  ;;  %v924_v46 = vld [vmem:[%s2122_s11 + $0xc] sm:$0x2]  ;;  %s1641_s11 = scalar_lea.hbm %s2622_s4, %s1845_s8 }
  0x89   : > { %v2215_v50 = vld.sshfl [vmem:[#allocation1 + $0x30] sm:$0xff pattern:$0x75643120] }
  0x8a   : > { %804 = vst [vmem:[#allocation1 + $0x30] ss:$2 sm:$0xff] %v783_v47  ;;  %v2218_v52 = vld.sshfl [vmem:[#allocation1 + $0x20] sm:$0xff pattern:$0x75643120] }
  0x8b   : > { %799 = vst [vmem:[#allocation1 + $0x20] ss:$2 sm:$0xff] %v782_v51 }
  0x8e   : > { %v2223_v56 = vld.sshfl [vmem:[#allocation1] sm:$0xff pattern:$0x75643120] }
  0x8f   : > { %v2225_v57 = vld.sshfl [vmem:[#allocation1 + $0x10] sm:$0xff pattern:$0x75643120]  ;;  %808 = vst [vmem:[#allocation1] ss:$2 sm:$0xff] %v784_v53 }
  0x90   : > { %812 = vst [vmem:[#allocation1 + $0x10] ss:$2 sm:$0xff] %v785_v54  ;;  %v987_v53 = vld [vmem:[%s2134_s12] sm:$0x2]  ;;  %v988_v54 = vld [vmem:[%s2134_s12 + $0x2] sm:$0x2] }
  0x91   : > { %v2228_v59 = vld.sshfl [vmem:[#allocation1 + $0x30] sm:$0xff pattern:$0x75643120] }
  0x92   : > { %820 = vst [vmem:[#allocation1 + $0x30] ss:$2 sm:$0xff] %v787_v55  ;;  %v2230_v60 = vld.sshfl [vmem:[#allocation1 + $0x20] sm:$0xff pattern:$0x75643120] }
  0x93   : > { %816 = vst [vmem:[#allocation1 + $0x20] ss:$2 sm:$0xff] %v786_v58  ;;  %v990_v58 = vld [vmem:[%s2134_s12 + $0x6] sm:$0x2] }
  0x96   : > { %v2234_v63 = vld.sshfl [vmem:[#allocation1] sm:$0xff pattern:$0x75643120] }
  0x97   : > { %v2237_v1 = vld.sshfl [vmem:[#allocation1 + $0x10] sm:$0xff pattern:$0x75643120]  ;;  %858 = vst [vmem:[#allocation1] ss:$2 sm:$0xff] %v849_v61 }
  0x98   : > { %863 = vst [vmem:[#allocation1 + $0x10] ss:$2 sm:$0xff] %v850_v62 }
  0x99   : > { %v2239_v2 = vld.sshfl [vmem:[#allocation1 + $0x30] sm:$0xff pattern:$0x75643120] }
  0x9a   : > { %873 = vst [vmem:[#allocation1 + $0x30] ss:$2 sm:$0xff] %v852_v0  ;;  %v2242_v4 = vld.sshfl [vmem:[#allocation1 + $0x20] sm:$0xff pattern:$0x75643120] }
  0x9b   : > { %868 = vst [vmem:[#allocation1 + $0x20] ss:$2 sm:$0xff] %v851_v3  ;;  %v989_v0 = vld [vmem:[%s2134_s12 + $0x4] sm:$0x2] }
  0x9e   : > { %v2247_v12 = vld.sshfl [vmem:[#allocation1] sm:$0xff pattern:$0x75643120] }
  0x9f   : > { %2627 = vst [vmem:[#allocation10_spill] sm:$0xff] %v2247_v12  ;;  %v2249_v13 = vld.sshfl [vmem:[#allocation1 + $0x10] sm:$0xff pattern:$0x75643120] }
  0xa0   : > { %2628 = vst [vmem:[#allocation11_spill] sm:$0xff] %v2249_v13 }
  0xa1   : > { %877 = vst [vmem:[#allocation1] ss:$2 sm:$0xff] %v853_v5  ;;  %v2252_v18 = vld.sshfl [vmem:[#allocation1 + $0x30] sm:$0xff pattern:$0x75643120] }
  0xa2   : > { %881 = vst [vmem:[#allocation1 + $0x10] ss:$2 sm:$0xff] %v854_v7  ;;  %v2254_v19 = vld.sshfl [vmem:[#allocation1 + $0x20] sm:$0xff pattern:$0x75643120] }
  0xa3   : > { %2629 = vst [vmem:[#allocation12_spill] sm:$0xff] %v2252_v18  ;;  %v991_v5 = vld [vmem:[%s2134_s12 + $0x8] sm:$0x2]  ;;  %v992_v7 = vld [vmem:[%s2134_s12 + $0xa] sm:$0x2] }
  0xa4   : > { %889 = vst [vmem:[#allocation1 + $0x30] ss:$2 sm:$0xff] %v856_v11  ;;  %v994_v11 = vld [vmem:[%s2134_s12 + $0xe] sm:$0x2] }
  0xa5   : > { %2630 = vst [vmem:[#allocation13_spill] sm:$0xff] %v2254_v19 }
  0xa6   : > { %885 = vst [vmem:[#allocation1 + $0x20] ss:$2 sm:$0xff] %v855_v17 }
  0xa8   : > { %v2258_v23 = vld.sshfl [vmem:[#allocation1] sm:$0xff pattern:$0x75643120] }
  0xa9   : > { %2631 = vst [vmem:[#allocation14_spill] sm:$0xff] %v2258_v23  ;;  %v2261_v29 = vld.sshfl [vmem:[#allocation1 + $0x10] sm:$0xff pattern:$0x75643120] }
  0xaa   : > { %2632 = vst [vmem:[#allocation15_spill] sm:$0xff] %v2261_v29  ;;  %v690_v29 = vunpack.c.l.b16 %v2189_v33  ;;  %v1060_v23 = vld [vmem:[%s2305_s13 + $0x8] sm:$0x1]  ;;  %v1061_v33 = vld [vmem:[%s2305_s13 + $0xa] sm:$0x1] }
  0xab   : > { %927 = vst [vmem:[#allocation1] ss:$2 sm:$0xff] %v918_v21  ;;  %v2263_v30 = vld.sshfl [vmem:[#allocation1 + $0x30] sm:$0xff pattern:$0x75643120] }
  0xac   : > { %932 = vst [vmem:[#allocation1 + $0x10] ss:$2 sm:$0xff] %v919_v22  ;;  %v993_v22 = vld [vmem:[%s2134_s12 + $0xc] sm:$0x2]  ;;  %s1642_s12 = sshll.u32 %s2484_s21, 4  ;;  %s1643_s12 = int_to_ptr.vmem [resolvable:$true] %s1642_s12 }
  0xad   : > { %2633 = vst [vmem:[#allocation16_spill] sm:$0xff] %v2263_v30  ;;  %v2266_v35 = vld.sshfl [vmem:[#allocation1 + $0x20] sm:$0xff pattern:$0x75643120]  ;;  %v687_v30 = vunpack.c.l.b16 %v2182_v28 }
  0xae   : > { %942 = vst [vmem:[#allocation1 + $0x30] ss:$2 sm:$0xff] %v921_v27 }
  0xaf   : > { %2634 = vst [vmem:[#allocation17_spill] sm:$0xff] %v2266_v35  ;;  %v689_v35 = vunpack.c.l.b16 %v2187_v32  ;;  %v695_v18 = vrot.slane %v687_v30, 7 }
  0xb0   : > { %937 = vst [vmem:[#allocation1 + $0x20] ss:$2 sm:$0xff] %v920_v31 }
  0xb2   : > { %v2271_v43 = vld.sshfl [vmem:[#allocation1] sm:$0xff pattern:$0x75643120] }
  0xb3   : > { %v2273_v45 = vld.sshfl [vmem:[#allocation1 + $0x10] sm:$0xff pattern:$0x75643120]  ;;  %946 = vst [vmem:[#allocation1] ss:$2 sm:$0xff] %v922_v37 }
  0xb4   : > { %950 = vst [vmem:[#allocation1 + $0x10] ss:$2 sm:$0xff] %v923_v38  ;;  %v1056_v37 = vld [vmem:[%s2305_s13] sm:$0x1] }
  0xb5   : > { %v2276_v47 = vld.sshfl [vmem:[#allocation1 + $0x30] sm:$0xff pattern:$0x75643120] }
  0xb6   : > { %958 = vst [vmem:[#allocation1 + $0x30] ss:$2 sm:$0xff] %v925_v39 }
  0xb7   : > { %v2278_v51 = vld.sshfl [vmem:[#allocation1 + $0x20] sm:$0xff pattern:$0x75643120] }
  0xb8   : > { %954 = vst [vmem:[#allocation1 + $0x20] ss:$2 sm:$0xff] %v924_v46 }
  0xba   : > { %v2282_v55 = vld.sshfl [vmem:[#allocation1] sm:$0xff pattern:$0x75643120] }
  0xbb   : > { %v2285_v61 = vld.sshfl [vmem:[#allocation1 + $0x10] sm:$0xff pattern:$0x75643120]  ;;  %996 = vst [vmem:[#allocation1] ss:$2 sm:$0xff] %v987_v53 }
  0xbc   : > { %1001 = vst [vmem:[#allocation1 + $0x10] ss:$2 sm:$0xff] %v988_v54  ;;  %v1057_v53 = vld [vmem:[%s2305_s13 + $0x2] sm:$0x1] }
  0xbd   : > { %v2287_v62 = vld.sshfl [vmem:[#allocation1 + $0x30] sm:$0xff pattern:$0x75643120] }
  0xbe   : > { %1011 = vst [vmem:[#allocation1 + $0x30] ss:$2 sm:$0xff] %v990_v58  ;;  %v1058_v58 = vld [vmem:[%s2305_s13 + $0x4] sm:$0x1] }
  0xbf   : > { %v2290_v3 = vld.sshfl [vmem:[#allocation1 + $0x20] sm:$0xff pattern:$0x75643120] }
  0xc0   : > { %1006 = vst [vmem:[#allocation1 + $0x20] ss:$2 sm:$0xff] %v989_v0 }
  0xc2   : > { %v2295_v17 = vld.sshfl [vmem:[#allocation1] sm:$0xff pattern:$0x75643120] }
  0xc3   : > { %v2297_v21 = vld.sshfl [vmem:[#allocation1 + $0x10] sm:$0xff pattern:$0x75643120]  ;;  %1015 = vst [vmem:[#allocation1] ss:$2 sm:$0xff] %v991_v5 }
  0xc4   : > { %1019 = vst [vmem:[#allocation1 + $0x10] ss:$2 sm:$0xff] %v992_v7  ;;  %v1059_v5 = vld [vmem:[%s2305_s13 + $0x6] sm:$0x1] }
  0xc5   : > { %v2300_v27 = vld.sshfl [vmem:[#allocation1 + $0x30] sm:$0xff pattern:$0x75643120] }
  0xc6   : > { %1027 = vst [vmem:[#allocation1 + $0x30] ss:$2 sm:$0xff] %v994_v11  ;;  %v685_v11 = vunpack.c.l.b16 %v2175_v24 }
  0xc7   : > { %v2302_v31 = vld.sshfl [vmem:[#allocation1 + $0x20] sm:$0xff pattern:$0x75643120] }
  0xc8   : > { %1023 = vst [vmem:[#allocation1 + $0x20] ss:$2 sm:$0xff] %v993_v22  ;;  %v686_v22 = vunpack.c.l.b16 %v2177_v25  ;;  %v693_v19 = vrot.slane %v685_v11, 1  ;;  %v699_v25 = vrot.slane %v689_v35, 5 }
  0xca   : > { %v2308_v38 = vld.sshfl [vmem:[#allocation1] sm:$0xff pattern:$0x75643120]  ;;  %v694_v28 = vsel %vm550_vm0, %v686_v22, %v693_v19 }
  0xcb   : > { %v2310_v39 = vld.sshfl [vmem:[#allocation1 + $0x10] sm:$0xff pattern:$0x75643120]  ;;  %v696_v32 = vsel %vm553_vm1, %v695_v18, %v694_v28 }
  0xcc   : > { %1066 = vst [vmem:[#allocation1] ss:$4 sm:$0xff] %v1056_v37  ;;  %v688_v37 = vunpack.c.l.b16 %v2179_v26  ;;  %v701_v26 = vrot.slane %v690_v29, 4  ;;  %v1062_v29 = vld [vmem:[%s2305_s13 + $0xc] sm:$0x1] }
  0xcd   : > { %v2312_v46 = vld.sshfl [vmem:[#allocation1 + $0x30] sm:$0xff pattern:$0x75643120] }
  0xce   : > { %2635 = vst [vmem:[#allocation18_spill] sm:$0xff] %v2312_v46  ;;  %v697_v24 = vrot.slane %v688_v37, 6 }
  0xcf   : > { %v2315_v54 = vld.sshfl [vmem:[#allocation1 + $0x20] sm:$0xff pattern:$0x75643120] }
  0xd0   : > { %2636 = vst [vmem:[#allocation19_spill] sm:$0xff] %v2315_v54 }
  0xd1   : > { %1071 = vst [vmem:[#allocation1 + $0x20] ss:$4 sm:$0xff] %v1057_v53  ;;  %v691_v53 = vunpack.c.l.b16 %v2194_v36  ;;  %v698_v36 = vsel %vm556_vm2, %v697_v24, %v696_v32 }
  0xd2   : > { %v700_v30 = vsel %vm559_vm3, %v699_v25, %v698_v36 }
  0xd3   : > { %v1067_v0 = vld.sshfl [vmem:[#allocation1] sm:$0xff pattern:$0x73625140] }
  0xd4   : > { %1075 = vst [vmem:[#allocation1] ss:$4 sm:$0xff] %v1058_v58  ;;  %v692_v58 = vunpack.c.l.b16 %v2191_v34  ;;  %v1098_v34 = vunpack.c.l.b16 %v1067_v0 }
  0xd6   : > { %v705_v54 = vrot.slane %v692_v58, 2  ;;  %v1063_v58 = vld [vmem:[%s2305_s13 + $0xe] sm:$0x1] }
  0xd8   : > { %v1072_v7 = vld.sshfl [vmem:[#allocation1 + $0x20] sm:$0xff pattern:$0x73625140] }
  0xd9   : > { %1079 = vst [vmem:[#allocation1 + $0x20] ss:$4 sm:$0xff] %v1059_v5  ;;  %v1099_v13 = vunpack.c.l.b16 %v1072_v7  ;;  %v703_v5 = vrot.slane %v691_v53, 3  ;;  %v702_v7 = vsel %vm562_vm4, %v701_v26, %v700_v30 }
  0xdb   : > { %v1076_v12 = vld.sshfl [vmem:[#allocation1] sm:$0xff pattern:$0x73625140]  ;;  %v1106_v11 = vrot.slane %v1099_v13, 7 }
  0xdc   : > { %1083 = vst [vmem:[#allocation1] ss:$4 sm:$0xff] %v1060_v23  ;;  %v1100_v46 = vunpack.c.l.b16 %v1076_v12  ;;  %v704_v23 = vsel %vm565_vm5, %v703_v5, %v702_v7 }
  0xdd   : > { %v706_v22 = vsel %vm568_vm6, %v705_v54, %v704_v23  ;;  %v1108_v12 = vsel %vm550_vm0, %v1106_v11, %v1098_v34 }
  0xde   : > { %v1109_v18 = vrot.slane %v1100_v46, 6  ;;  %v707_v37 = vpack.c.b16 %v706_v22, %v706_v22  ;;  %v1198_v22 = vld [vmem:[%s2305_s13] sm:$0x1] }
  0xe0   : > { %v1080_v35 = vld.sshfl [vmem:[#allocation1 + $0x20] sm:$0xff pattern:$0x73625140]  ;;  %v1111_v24 = vsel %vm553_vm1, %v1109_v18, %v1108_v12  ;;  %710 = vst.msk [vmem:[#allocation2 + $0x4] sm:$0xf] %vm572_vm7, %v707_v37 }
  0xe1   : > { %1087 = vst [vmem:[#allocation1 + $0x20] ss:$4 sm:$0xff] %v1061_v33  ;;  %v1101_v19 = vunpack.c.l.b16 %v1080_v35  ;;  %v1199_v12 = vld [vmem:[%s2305_s13 + $0x2] sm:$0x1]  ;;  %v1200_v37 = vld [vmem:[%s2305_s13 + $0x4] sm:$0x1] }
  0xe3   : > { %v1084_v53 = vld.sshfl [vmem:[#allocation1] sm:$0xff pattern:$0x73625140]  ;;  %v1112_v0 = vrot.slane %v1101_v19, 5 }
  0xe4   : > { %1091 = vst [vmem:[#allocation1] ss:$4 sm:$0xff] %v1062_v29  ;;  %v1102_v13 = vunpack.c.l.b16 %v1084_v53 }
  0xe5   : > { %v1114_v46 = vsel %vm556_vm2, %v1112_v0, %v1111_v24  ;;  %v1203_v24 = vld [vmem:[%s2305_s13 + $0xa] sm:$0x1] }
  0xe6   : > { %v1115_v28 = vrot.slane %v1102_v13, 4  ;;  %v1201_v13 = vld [vmem:[%s2305_s13 + $0x6] sm:$0x1] }
  0xe7   : > { %v1207_v36 = vld [vmem:[#allocation2 + $0x4] sm:$0xf] }
  0xe8   : > { %v1088_v25 = vld.sshfl [vmem:[#allocation1 + $0x20] sm:$0xff pattern:$0x73625140]  ;;  %v1117_v5 = vsel %vm559_vm3, %v1115_v28, %v1114_v46  ;;  %v1268_v34 = vsel %vm1128_vm8, %v1207_v36, 0 }
  0xe9   : > { %1095 = vst [vmem:[#allocation1 + $0x20] ss:$4 sm:$0xff] %v1063_v58  ;;  %v1103_v26 = vunpack.c.l.b16 %v1088_v25  ;;  %1277 = vmatpush.bf16.xpose.msra.mxu2 %v1268_v34  ;;  %v1202_v58 = vld [vmem:[%s2305_s13 + $0x8] sm:$0x1]  ;;  %v1205_v46 = vld [vmem:[%s2305_s13 + $0xe] sm:$0x1] }
  0xeb   : > { %v1118_v32 = vrot.slane %v1103_v26, 3  ;;  %v1092_v54 = vld.sshfl [vmem:[#allocation1] sm:$0xff pattern:$0x73625140] }
  0xec   : > { %v1104_v33 = vunpack.c.l.b16 %v1092_v54  ;;  %1209 = vst [vmem:[#allocation1] ss:$4 sm:$0xff] %v1198_v22  ;;  %v1204_v26 = vld [vmem:[%s2305_s13 + $0xc] sm:$0x1] }
  0xed   : > { %v1120_v11 = vsel %vm562_vm4, %v1118_v32, %v1117_v5 }
  0xee   : > { %v1121_v30 = vrot.slane %v1104_v33, 2 }
  0xf0   : > { %v1096_v35 = vld.sshfl [vmem:[#allocation1 + $0x20] sm:$0xff pattern:$0x73625140]  ;;  %v1123_v19 = vsel %vm565_vm5, %v1121_v30, %v1120_v11 }
  0xf1   : > { %v1105_v7 = vunpack.c.l.b16 %v1096_v35  ;;  %1214 = vst [vmem:[#allocation1 + $0x20] ss:$4 sm:$0xff] %v1199_v12 }
  0xf3   : > { %v1124_v23 = vrot.slane %v1105_v7, 1  ;;  %v1210_v53 = vld.sshfl [vmem:[#allocation1] sm:$0xff pattern:$0x73625140] }
  0xf4   : > { %1218 = vst [vmem:[#allocation1] ss:$4 sm:$0xff] %v1200_v37  ;;  %v1241_v5 = vunpack.c.l.b16 %v1210_v53 }
  0xf5   : > { %v1126_v29 = vsel %vm568_vm6, %v1124_v23, %v1123_v19 }
  0xf6   : > { %v1127_v18 = vpack.c.b16 %v1126_v29, %v1126_v29  ;;  %v1249_v11 = vrot.slane %v1241_v5, 1 }
  0xf8   : > { %1829 = vmatmul.msk.bf16.vlgmr.msra.gmra.mxu0 %vm1128_vm8, %v1127_v18  ;;  %v1215_v0 = vld.sshfl [vmem:[#allocation1 + $0x20] sm:$0xff pattern:$0x73625140] }
  0xf9   : > { %1222 = vst [vmem:[#allocation1 + $0x20] ss:$4 sm:$0xff] %v1201_v13  ;;  %v1242_v36 = vunpack.c.l.b16 %v1215_v0 }
  0xfb   : > { %v1219_v25 = vld.sshfl [vmem:[#allocation1] sm:$0xff pattern:$0x73625140]  ;;  %v1250_v19 = vsel %vm550_vm0, %v1242_v36, %v1249_v11  ;;  %v1341_v36 = vld [vmem:[%s2305_s13 + $0x6] sm:$0x2] }
  0xfc   : > { %1226 = vst [vmem:[#allocation1] ss:$4 sm:$0xff] %v1202_v58  ;;  %v1243_v33 = vunpack.c.l.b16 %v1219_v25 }
  0xfe   : > { %v1251_v35 = vrot.slane %v1243_v33, 7  ;;  %v1340_v33 = vld [vmem:[%s2305_s13 + $0x4] sm:$0x2] }
 0x100   : > { %v1223_v28 = vld.sshfl [vmem:[#allocation1 + $0x20] sm:$0xff pattern:$0x73625140]  ;;  %v1252_v18 = vsel %vm553_vm1, %v1251_v35, %v1250_v19 }
 0x101   : > { %1230 = vst [vmem:[#allocation1 + $0x20] ss:$4 sm:$0xff] %v1203_v24  ;;  %v1244_v34 = vunpack.c.l.b16 %v1223_v28  ;;  %v1343_v35 = vld [vmem:[%s2305_s13 + $0xa] sm:$0x2] }
 0x103   : > { %v1227_v32 = vld.sshfl [vmem:[#allocation1] sm:$0xff pattern:$0x73625140]  ;;  %v1253_v23 = vrot.slane %v1244_v34, 6 }
 0x104   : > { %1234 = vst [vmem:[#allocation1] ss:$4 sm:$0xff] %v1204_v26  ;;  %v1245_v30 = vunpack.c.l.b16 %v1227_v32  ;;  %v1338_v32 = vld [vmem:[%s2305_s13] sm:$0x2] }
 0x105   : > { %v1254_v53 = vsel %vm556_vm2, %v1253_v23, %v1252_v18  ;;  %v1344_v23 = vld [vmem:[%s2305_s13 + $0xc] sm:$0x2] }
 0x106   : > { %v1255_v22 = vrot.slane %v1245_v30, 5  ;;  %v1342_v30 = vld [vmem:[%s2305_s13 + $0x8] sm:$0x2] }
 0x108   : > { %v1231_v54 = vld.sshfl [vmem:[#allocation1 + $0x20] sm:$0xff pattern:$0x73625140]  ;;  %v1256_v58 = vsel %vm559_vm3, %v1255_v22, %v1254_v53 }
 0x109   : > { %1238 = vst [vmem:[#allocation1 + $0x20] ss:$4 sm:$0xff] %v1205_v46  ;;  %v1246_v7 = vunpack.c.l.b16 %v1231_v54  ;;  %v1339_v54 = vld [vmem:[%s2305_s13 + $0x2] sm:$0x2] }
 0x10b   : > { %v1235_v29 = vld.sshfl [vmem:[#allocation1] sm:$0xff pattern:$0x73625140]  ;;  %v1257_v13 = vrot.slane %v1246_v7, 4 }
 0x10c   : > { %v1247_v37 = vunpack.c.l.b16 %v1235_v29  ;;  %1349 = vst [vmem:[#allocation1] ss:$4 sm:$0xff] %v1338_v32  ;;  %v1345_v29 = vld [vmem:[%s2305_s13 + $0xe] sm:$0x2]  ;;  %v961_v32 = vunpack.c.l.b16 %v2271_v43 }
 0x10d   : > { %v1258_v24 = vsel %vm562_vm4, %v1257_v13, %v1256_v58  ;;  %v1478_v58 = vld [vmem:[%s2305_s13] sm:$0x2] }
 0x10e   : > { %v1259_v25 = vrot.slane %v1247_v37, 3 }
 0x110   : > { %v1239_v12 = vld.sshfl [vmem:[#allocation1 + $0x20] sm:$0xff pattern:$0x73625140]  ;;  %v1260_v26 = vsel %vm565_vm5, %v1259_v25, %v1258_v24  ;;  %v1479_v24 = vld [vmem:[%s2305_s13 + $0x2] sm:$0x2] }
 0x111   : > { %v1248_v0 = vunpack.c.l.b16 %v1239_v12  ;;  %1354 = vst [vmem:[#allocation1 + $0x20] ss:$4 sm:$0xff] %v1339_v54  ;;  %v1480_v25 = vld [vmem:[%s2305_s13 + $0x4] sm:$0x2]  ;;  %v962_v54 = vunpack.c.l.b16 %v2273_v45  ;;  %v1483_v45 = vld [vmem:[%s2305_s13 + $0xa] sm:$0x2] }
 0x113   : > { %v1261_v28 = vrot.slane %v1248_v0, 2  ;;  %v2368_v34 = vld.sshfl [vmem:[#allocation1] sm:$0xff pattern:$0x73625140] }
 0x114   : > { %1358 = vst [vmem:[#allocation1] ss:$4 sm:$0xff] %v1340_v33  ;;  %v969_v33 = vrot.slane %v961_v32, 3 }
 0x115   : > { %v1262_v46 = vsel %vm568_vm6, %v1261_v28, %v1260_v26  ;;  %v1481_v26 = vld [vmem:[%s2305_s13 + $0x6] sm:$0x2] }
 0x116   : > { %v1263_v5 = vpack.c.b16 %v1262_v46, %v1262_v46 }
 0x118   : > { %1831 = vmatmul.msk.bf16.vlgmr.msra.gmra.mxu2 %vm1128_vm8, %v1263_v5  ;;  %v2370_v11 = vld.sshfl [vmem:[#allocation1 + $0x20] sm:$0xff pattern:$0x73625140]  ;;  %v963_v5 = vunpack.c.l.b16 %v2278_v51 }
 0x119   : > { %1362 = vst [vmem:[#allocation1 + $0x20] ss:$4 sm:$0xff] %v1341_v36  ;;  %v970_v36 = vrot.slane %v962_v54, 2 }
 0x11b   : > { %v2374_v7 = vld.sshfl [vmem:[#allocation1] sm:$0xff pattern:$0x73625140] }
 0x11c   : > { %1366 = vst [vmem:[#allocation1] ss:$4 sm:$0xff] %v1342_v30  ;;  %v965_v30 = vunpack.c.l.b16 %v2282_v55 }
 0x120   : > { %v2376_v19 = vld.sshfl [vmem:[#allocation1 + $0x20] sm:$0xff pattern:$0x73625140] }
 0x121   : > { %1370 = vst [vmem:[#allocation1 + $0x20] ss:$4 sm:$0xff] %v1343_v35  ;;  %v972_v35 = vrot.slane %v963_v5, 1 }
 0x123   : > { %v2380_v18 = vld.sshfl [vmem:[#allocation1] sm:$0xff pattern:$0x73625140] }
 0x124   : > { %1374 = vst [vmem:[#allocation1] ss:$4 sm:$0xff] %v1344_v23  ;;  %v964_v23 = vunpack.c.l.b16 %v2276_v47 }
 0x128   : > { %v2382_v22 = vld.sshfl [vmem:[#allocation1 + $0x20] sm:$0xff pattern:$0x73625140] }
 0x129   : > { %1378 = vst [vmem:[#allocation1 + $0x20] ss:$4 sm:$0xff] %v1345_v29  ;;  %v966_v29 = vunpack.c.l.b16 %v2285_v61 }
 0x12b   : > { %v2388_v13 = vld.sshfl [vmem:[#allocation1] sm:$0xff pattern:$0x73625140] }
 0x12c   : > { %1489 = vst [vmem:[#allocation1] ss:$4 sm:$0xff] %v1478_v58  ;;  %v967_v58 = vunpack.c.l.b16 %v2290_v3 }
 0x12e   : > { %v979_v32 = vrot.slane %v967_v58, 5 }
 0x130   : > { %v2390_v0 = vld.sshfl [vmem:[#allocation1 + $0x20] sm:$0xff pattern:$0x73625140] }
 0x131   : > { %1494 = vst [vmem:[#allocation1 + $0x20] ss:$4 sm:$0xff] %v1479_v24  ;;  %v975_v24 = vrot.slane %v965_v30, 7  ;;  %v1484_v30 = vld [vmem:[%s2305_s13 + $0xc] sm:$0x2] }
 0x133   : > { %v1490_v28 = vld.sshfl [vmem:[#allocation1] sm:$0xff pattern:$0x73625140] }
 0x134   : > { %1498 = vst [vmem:[#allocation1] ss:$4 sm:$0xff] %v1480_v25  ;;  %v968_v25 = vunpack.c.l.b16 %v2287_v62  ;;  %v1485_v62 = vld [vmem:[%s2305_s13 + $0xe] sm:$0x2] }
 0x136   : > { %v981_v54 = vrot.slane %v968_v25, 4 }
 0x138   : > { %v1495_v46 = vld.sshfl [vmem:[#allocation1 + $0x20] sm:$0xff pattern:$0x73625140] }
 0x139   : > { %1502 = vst [vmem:[#allocation1 + $0x20] ss:$4 sm:$0xff] %v1481_v26  ;;  %v977_v26 = vrot.slane %v966_v29, 6  ;;  %v1521_v29 = vunpack.c.l.b16 %v1490_v28 }
 0x13b   : > { %v1499_v51 = vld.sshfl [vmem:[#allocation1] sm:$0xff pattern:$0x73625140]  ;;  %v1529_v58 = vrot.slane %v1521_v29, 3 }
 0x140   : > { %v1503_v47 = vld.sshfl [vmem:[#allocation1 + $0x20] sm:$0xff pattern:$0x73625140] }
 0x141   : > { %1510 = vst [vmem:[#allocation1 + $0x20] ss:$4 sm:$0xff] %v1483_v45 }
 0x175   : > { %v2384_v12 = vpop.f32.mrf.mxu0 }
 0x176   : > { %v1148_v37 = vsel %vm1128_vm8, %v2384_v12, -inf }
 0x177   : > { %1149 = vmax.xlane.f32.xlu0 %v1148_v37  ;;  %v971_v37 = vsel %vm550_vm0, %v970_v36, %v969_v33 }
 0x178   : > { %v973_v43 = vsel %vm553_vm1, %v972_v35, %v971_v37  ;;  %v1522_v37 = vunpack.c.l.b16 %v1495_v46 }
 0x179   : > { %v974_v55 = vsel %vm556_vm2, %v964_v23, %v973_v43  ;;  %v1511_v23 = vld.sshfl [vmem:[#allocation1 + $0x20] sm:$0xff pattern:$0x73625140] }
 0x17a   : > { %v976_v61 = vsel %vm559_vm3, %v975_v24, %v974_v55  ;;  %1518 = vst [vmem:[#allocation1 + $0x20] ss:$4 sm:$0xff] %v1485_v62  ;;  %v1530_v43 = vrot.slane %v1522_v37, 2  ;;  %v1524_v55 = vunpack.c.l.b16 %v1503_v47 }
 0x17b   : > { %v978_v3 = vsel %vm562_vm4, %v977_v26, %v976_v61  ;;  %v1526_v26 = vunpack.c.l.b16 %v1511_v23 }
 0x17c   : > { %v980_v5 = vsel %vm565_vm5, %v979_v32, %v978_v3  ;;  %v1531_v61 = vsel %vm550_vm0, %v1530_v43, %v1529_v58 }
 0x17d   : > { %v1146_v53 = vpop.f32.mrf.mxu0  ;;  %v982_v33 = vsel %vm568_vm6, %v981_v54, %v980_v5  ;;  %v1537_v46 = vrot.slane %v1526_v26, 6 }
 0x17e   : > { %v1482_v53 = vld [vmem:[%s2305_s13 + $0x8] sm:$0x2]  ;;  %v983_v36 = vpack.c.b16 %v982_v33, %v982_v33  ;;  %s1644_s13 = sshll.u32 %s1641_s11, 4  ;;  %s1645_s13 = int_to_ptr.hbm [resolvable:$true] %s1644_s13 }
 0x17f   : > { %1506 = vst [vmem:[#allocation1] ss:$4 sm:$0xff] %v1482_v53  ;;  %v1523_v53 = vunpack.c.l.b16 %v1499_v51  ;;  %s1936_s22 = sshra.s32 %s1645_s13, 4  ;;  %s1937_s22 = int_to_ptr.hbm [resolvable:$true] %s1936_s22 }
 0x180   : > { %986 = vst.msk [vmem:[#allocation2 + $0xc] sm:$0xf] %vm572_vm7, %v983_v36  ;;  %s1938_s24 = scalar_lea.hbm %s1937_s22, 32  ;;  %p1943_p4 = scmp.lt.s32.totalorder %s1937_s22, %s2622_s4 }
 0x181   : > { %v1532_v45 = vrot.slane %v1523_v53, 1  ;;  %v1519_v51 = vld.sshfl [vmem:[#allocation1 + $0x20] sm:$0xff pattern:$0x73625140]  ;;  %p1939_p1 = scmp.ne.s32.totalorder %s1937_s22, %s1938_s24  ;;  %p1944_p6 = scmp.lt.s32.totalorder %s1942_s18, %s1938_s24 }
 0x183   : > { %v1533_v3 = vsel %vm553_vm1, %v1532_v45, %v1531_v61  ;;  %v618_v61 = vunpack.c.l.b16 %v2152_v8  ;;  %p1940_p2 = pnand %p1939_p1, %p2074_p5  ;;  %p1945_p7 = por %p1944_p6, %p1943_p4 }
 0x184   : > { %v1534_v28 = vsel %vm556_vm2, %v1524_v55, %v1533_v3  ;;  %v617_v3 = vunpack.c.l.b16 %v2150_v6 }
 0x185   : > { %p1941_p3 = pneg %p1940_p2 }
 0x186   : > { %v1507_v35 = vld.sshfl [vmem:[#allocation1] sm:$0xff pattern:$0x73625140] }
 0x187   : > { %1514 = vst [vmem:[#allocation1] ss:$4 sm:$0xff] %v1484_v30  ;;  %v1525_v24 = vunpack.c.l.b16 %v1507_v35  ;;  %v1487_v25 = vld [vmem:[#allocation2 + $0xc] sm:$0xf]  ;;  %v1528_v30 = vunpack.c.l.b16 %v1519_v51  ;;  %p1946_p8 = pnand %p1945_p7, %p1941_p3 }
 0x188   : > { %v1548_v32 = vsel %vm1128_vm8, %v1487_v25, 0 }
 0x189   : > { %v1535_v54 = vrot.slane %v1525_v24, 7  ;;  %1557 = vmatpush.bf16.xpose.msrb.mxu0 %v1548_v32  ;;  %v1541_v35 = vrot.slane %v1528_v30, 4  ;;  %v619_v32 = vunpack.c.l.b16 %v2154_v9  ;;  %v624_v9 = vunpack.c.l.b16 %v2166_v16 }
 0x18a   : > { %v824_v16 = vunpack.c.l.b16 %v2225_v57 }
 0x18b   : > { %v1536_v36 = vsel %vm559_vm3, %v1535_v54, %v1534_v28  ;;  %v620_v54 = vunpack.c.l.b16 %v2157_v10  ;;  %v621_v28 = vunpack.c.l.b16 %v2162_v14 }
 0x18c   : > { %v1538_v47 = vsel %vm562_vm4, %v1537_v46, %v1536_v36  ;;  %v622_v46 = vunpack.c.l.b16 %v2164_v15  ;;  %v623_v36 = vunpack.c.l.b16 %v2170_v20 }
 0x18d   : > { %v631_v8 = vrot.slane %v621_v28, 4  ;;  %v830_v28 = vunpack.c.l.b16 %v2239_v2 }
 0x18e   : > { %v1515_v5 = vld.sshfl [vmem:[#allocation1] sm:$0xff pattern:$0x73625140] }
 0x18f   : > { %v1527_v33 = vunpack.c.l.b16 %v1515_v5  ;;  %v625_v5 = vrot.slane %v618_v61, 7  ;;  %v827_v61 = vunpack.c.l.b16 %v2234_v63 }
 0x191   : > { %v1539_v62 = vrot.slane %v1527_v33, 5  ;;  %v626_v51 = vsel %vm550_vm0, %v625_v5, %v617_v3  ;;  %v629_v33 = vrot.slane %v620_v54, 5  ;;  %v829_v3 = vunpack.c.l.b16 %v2242_v4 }
 0x192   : > { %v837_v5 = vrot.slane %v827_v61, 6 }
 0x193   : > { %v1540_v23 = vsel %vm565_vm5, %v1539_v62, %v1538_v47  ;;  %v633_v47 = vrot.slane %v622_v46, 3  ;;  %v635_v62 = vrot.slane %v623_v36, 2 }
 0x194   : > { %v1542_v29 = vsel %vm568_vm6, %v1541_v35, %v1540_v23  ;;  %v637_v35 = vrot.slane %v624_v9, 1 }
 0x195   : > { %v1543_v37 = vpack.c.b16 %v1542_v29, %v1542_v29 }
 0x197   : > { %1837 = vmatmul.msk.bf16.vlgmr.msrb.gmra.mxu0 %vm1128_vm8, %v1543_v37 }
 0x19b   : > { %v1279_v53 = vpop.f32.mrf.mxu2 }
 0x19c   : > { %v1283_v58 = vsel %vm1128_vm8, %v1279_v53, -inf }
 0x19d   : > { %1284 = vmax.xlane.f32.xlu1 %v1283_v58 }
 0x1a3   : > { %v1281_v43 = vpop.f32.mrf.mxu2 }
 0x1a4   : > { %v823_v43 = vunpack.c.l.b16 %v2223_v56  ;;  %v828_v56 = vunpack.c.l.b16 %v2237_v1 }
 0x1ea   : > { %v1150_v24 = vpop.xlane.xlu0 %1149 }
 0x1eb   : > { %v1151_v45 = vsub.f32 %v2384_v12, %v1150_v24  ;;  %v627_v12 = vrot.slane %v619_v32, 6  ;;  %v832_v32 = vrot.slane %v824_v16, 1 }
 0x1ed   : > { %v1152_v25 = vmul.f32 1.442695, %v1151_v45  ;;  %v628_v30 = vsel %vm553_vm1, %v627_v12, %v626_v51  ;;  %v839_v12 = vrot.slane %v828_v56, 5 }
 0x1ee   : > { %v630_v6 = vsel %vm556_vm2, %v629_v33, %v628_v30  ;;  %v843_v33 = vrot.slane %v830_v28, 3 }
 0x1ef   : > { %1906 = vpow2.f32 %v1152_v25  ;;  %v632_v10 = vsel %vm559_vm3, %v631_v8, %v630_v6  ;;  %v826_v25 = vunpack.c.l.b16 %v2228_v59 }
 0x1f0   : > { %v634_v14 = vsel %vm562_vm4, %v633_v47, %v632_v10 }
 0x1f1   : > { %v636_v23 = vsel %vm565_vm5, %v635_v62, %v634_v14  ;;  %v835_v57 = vrot.slane %v826_v25, 7  ;;  %v1381_v14 = vunpack.c.l.b16 %v2368_v34  ;;  %v1383_v25 = vunpack.c.l.b16 %v2374_v7 }
 0x1f2   : > { %v638_v20 = vsel %vm568_vm6, %v637_v35, %v636_v23  ;;  %v1382_v35 = vunpack.c.l.b16 %v2370_v11  ;;  %v1385_v34 = vunpack.c.l.b16 %v2380_v18 }
 0x1f3   : > { %v639_v37 = vpack.c.b16 %v638_v20, %v638_v20 }
 0x1f4   : > { %v1390_v20 = vrot.slane %v1382_v35, 1  ;;  %v1395_v7 = vrot.slane %v1385_v34, 6 }
 0x1f5   : > { %v2427_v55 = vpop.eup %1906  ;;  %641 = vst.msk [vmem:[#allocation3] sm:$0xf] %vm572_vm7, %v639_v37 }
 0x1f6   : > { %v1154_v26 = vsel %vm1128_vm8, %v2427_v55, 0.0 }
 0x1f7   : > { %1155 = vadd.xlane.f32.xlu0 %v1154_v26  ;;  %v831_v26 = vrot.slane %v823_v43, 2  ;;  %v1384_v43 = vunpack.c.l.b16 %v2376_v19 }
 0x1f9   : > { %v833_v54 = vsel %vm550_vm0, %v832_v32, %v831_v26  ;;  %v1393_v61 = vrot.slane %v1384_v43, 7 }
 0x1fc   : > { %v1174_v63 = vld [vmem:[#allocation3] sm:$0xf] }
 0x1fd   : > { %v1180_v36 = vsel %vm1178_vm9, %v1174_v63, 0 }
 0x1fe   : > { %1189 = vmatpush.bf16.msra.mxu1 %v1180_v36  ;;  %v755_v36 = vunpack.c.l.b16 %v2201_v41  ;;  %v761_v41 = vunpack.c.l.b16 %v2215_v50 }
 0x210   : > { %v1285_v15 = vpop.xlane.xlu1 %1284 }
 0x211   : > { %v1286_v29 = vsub.f32 %v1279_v53, %v1285_v15  ;;  %v825_v53 = vunpack.c.l.b16 %v2230_v60  ;;  %v841_v60 = vrot.slane %v829_v3, 4 }
 0x213   : > { %v1287_v58 = vmul.f32 1.442695, %v1286_v29  ;;  %v834_v59 = vsel %vm553_vm1, %v825_v53, %v833_v54  ;;  %v1389_v29 = vrot.slane %v1381_v14, 2 }
 0x214   : > { %v2448_v24 = vpop.f32.mrf.mxu0  ;;  %v836_v46 = vsel %vm556_vm2, %v835_v57, %v834_v59  ;;  %v1386_v57 = vunpack.c.l.b16 %v2382_v22  ;;  %v1388_v22 = vunpack.c.l.b16 %v2390_v0  ;;  %v757_v0 = vunpack.c.l.b16 %v2203_v42 }
 0x215   : > { %1908 = vpow2.f32 %v1287_v58  ;;  %v1563_v45 = vsel %vm1128_vm8, %v2448_v24, -inf  ;;  %v838_v1 = vsel %vm559_vm3, %v837_v5, %v836_v46  ;;  %v1391_v26 = vsel %vm550_vm0, %v1390_v20, %v1389_v29 }
 0x216   : > { %1564 = vmax.xlane.f32.xlu2 %v1563_v45  ;;  %v840_v30 = vsel %vm562_vm4, %v839_v12, %v838_v1  ;;  %v1392_v56 = vsel %vm553_vm1, %v1383_v25, %v1391_v26  ;;  %v1387_v5 = vunpack.c.l.b16 %v2388_v13  ;;  %v1397_v28 = vrot.slane %v1386_v57, 5 }
 0x217   : > { %v842_v8 = vsel %vm565_vm5, %v841_v60, %v840_v30  ;;  %v1394_v54 = vsel %vm556_vm2, %v1393_v61, %v1392_v56  ;;  %v1401_v46 = vrot.slane %v1388_v22, 3  ;;  %v754_v13 = vunpack.c.l.b16 %v2199_v40 }
 0x218   : > { %v844_v9 = vsel %vm568_vm6, %v843_v33, %v842_v8  ;;  %v1396_v59 = vsel %vm559_vm3, %v1395_v7, %v1394_v54  ;;  %v1399_v12 = vrot.slane %v1387_v5, 4  ;;  %v1031_v22 = vunpack.c.l.b16 %v2297_v21 }
 0x219   : > { %v845_v6 = vpack.c.b16 %v844_v9, %v844_v9  ;;  %v762_v30 = vrot.slane %v754_v13, 1  ;;  %v759_v9 = vunpack.c.l.b16 %v2213_v49  ;;  %v1035_v13 = vunpack.c.l.b16 %v2310_v39 }
 0x21b   : > { %v2462_v51 = vpop.eup %1908  ;;  %848 = vst.msk [vmem:[#allocation2 + $0x8] sm:$0xf] %vm572_vm7, %v845_v6  ;;  %v763_v6 = vsel %vm550_vm0, %v755_v36, %v762_v30  ;;  %v2637_v36 = vld [vmem:[#allocation19_spill] sm:$0xff] }
 0x21c   : > { %v1289_v4 = vsel %vm1128_vm8, %v2462_v51, 0.0  ;;  %v1561_v2 = vpop.f32.mrf.mxu0 }
 0x21d   : > { %v758_v2 = vunpack.c.l.b16 %v2211_v48 }
 0x21e   : > { %1290 = vadd.xlane.f32.xlu2 %v1289_v4  ;;  %v756_v4 = vunpack.c.l.b16 %v2206_v44  ;;  %v770_v44 = vrot.slane %v759_v9, 4 }
 0x21f   : > { %v768_v14 = vrot.slane %v758_v2, 5  ;;  %v1046_v2 = vrot.slane %v1035_v13, 6 }
 0x220   : > { %v764_v8 = vrot.slane %v756_v4, 7 }
 0x222   : > { %v1347_v47 = vld [vmem:[#allocation2 + $0x8] sm:$0xf]  ;;  %v765_v40 = vsel %vm553_vm1, %v764_v8, %v763_v6 }
 0x223   : > { %v1408_v10 = vsel %vm1128_vm8, %v1347_v47, 0  ;;  %v766_v47 = vrot.slane %v757_v0, 6  ;;  %v1036_v0 = vunpack.c.l.b16 %v2637_v36 }
 0x224   : > { %1417 = vmatpush.bf16.xpose.msrb.mxu1 %v1408_v10 }
 0x225   : > { %v767_v42 = vsel %vm556_vm2, %v766_v47, %v765_v40 }
 0x226   : > { %v769_v48 = vsel %vm559_vm3, %v768_v14, %v767_v42 }
 0x227   : > { %v771_v49 = vsel %vm562_vm4, %v770_v44, %v769_v48 }
 0x26a   : > { %v1156_v62 = vpop.xlane.xlu0 %1155 }
 0x26b   : > { %1910 = vrcp.f32 %v1156_v62  ;;  %v1168_v58 = vand.u32 2147483648, %v1156_v62  ;;  %v1166_v45 = vand.u32 2147483647, %v1156_v62  ;;  %vm1162_vm11 = vweird.f32 %v1156_v62 }
 0x26d   : > { %v1169_v11 = vor.u32 1.1754944e-38, %v1168_v58  ;;  %vm1167_vm13 = vcmp.eq.f32.partialorder %v1166_v45, 8.507059e+37 }
 0x271   : > { %v1911_v15 = vpop.eup %1910 }
 0x272   : > { %v1158_v23 = vmul.f32 %v1911_v15, %v1156_v62  ;;  %vm1163_vm10 = vweird.f32 %v1911_v15  ;;  %v760_v62 = vunpack.c.l.b16 %v2218_v52 }
 0x273   : > { %vm1164_vm12 = vmor %vm1162_vm11, %vm1163_vm10 }
 0x274   : > { %v1159_v37 = vsub.f32 1.0, %v1158_v23  ;;  %v772_v35 = vrot.slane %v760_v62, 3 }
 0x276   : > { %v1160_v16 = vmul.f32 %v1911_v15, %v1159_v37  ;;  %v773_v23 = vsel %vm565_vm5, %v772_v35, %v771_v49 }
 0x278   : > { %v1161_v53 = vadd.f32 %v1911_v15, %v1160_v16 }
 0x27a   : > { %v1165_v32 = vsel %vm1164_vm12, %v1911_v15, %v1161_v53  ;;  %v774_v15 = vrot.slane %v761_v41, 2 }
 0x27b   : > { %v1170_v19 = vsel %vm1167_vm13, %v1169_v11, %v1165_v32 }
 0x27c   : > { %v1171_v3 = vmul.f32 %v2427_v55, %v1170_v19  ;;  %v1398_v55 = vsel %vm562_vm4, %v1397_v28, %v1396_v59  ;;  %v775_v29 = vsel %vm568_vm6, %v774_v15, %v773_v23  ;;  %v1030_v59 = vunpack.c.l.b16 %v2295_v17 }
 0x27d   : > { %v1400_v60 = vsel %vm565_vm5, %v1399_v12, %v1398_v55  ;;  %v776_v20 = vpack.c.b16 %v775_v29, %v775_v29  ;;  %v1032_v12 = vunpack.c.l.b16 %v2302_v31  ;;  %v2638_v31 = vld [vmem:[#allocation18_spill] sm:$0xff] }
 0x27e   : > { %1172 = vst.msk [vmem:[%s2484_s21] sm:$0xff] %vm1128_vm8, %v1171_v3  ;;  %v1173_v18 = vpack.c.bf16 %v1171_v3, %v1171_v3  ;;  %v1402_v63 = vsel %vm568_vm6, %v1401_v46, %v1400_v60  ;;  %v1038_v55 = vrot.slane %v1030_v59, 3  ;;  %v1034_v60 = vunpack.c.l.b16 %v2308_v38 }
 0x27f   : > { %v1403_v1 = vpack.c.b16 %v1402_v63, %v1402_v63  ;;  %779 = vst.msk [vmem:[#allocation3 + $0x4] sm:$0xf] %vm572_vm7, %v776_v20  ;;  %v1041_v63 = vrot.slane %v1032_v12, 1  ;;  %v1037_v30 = vunpack.c.l.b16 %v2638_v31 }
 0x280   : > { %1830 = vmatmul.msk.bf16.vlgmr.msra.gmra.mxu1 %vm1128_vm8, %v1173_v18  ;;  %v1044_v21 = vrot.slane %v1034_v60, 7 }
 0x281   : > { %v1050_v9 = vrot.slane %v1037_v30, 4 }
 0x286   : > { %v1311_v26 = vld [vmem:[#allocation3 + $0x4] sm:$0xf] }
 0x287   : > { %v1316_v34 = vsel %vm1178_vm9, %v1311_v26, 0 }
 0x288   : > { %1325 = vmatpush.bf16.msra.mxu3 %v1316_v34 }
 0x289   : > { %v1565_v33 = vpop.xlane.xlu2 %1564 }
 0x290   : > { %1834 = vmatmul.msk.bf16.vlgmr.msrb.gmra.mxu1 %vm1128_vm8, %v1403_v1 }
 0x291   : > { %v1291_v10 = vpop.xlane.xlu2 %1290 }
 0x292   : > { %1912 = vrcp.f32 %v1291_v10  ;;  %v1303_v58 = vand.u32 2147483648, %v1291_v10  ;;  %vm1297_vm14 = vweird.f32 %v1291_v10  ;;  %v1301_v43 = vand.u32 2147483647, %v1291_v10 }
 0x294   : > { %v1304_v45 = vor.u32 1.1754944e-38, %v1303_v58  ;;  %vm1302_vm11 = vcmp.eq.f32.partialorder %v1301_v43, 8.507059e+37 }
 0x298   : > { %v1913_v52 = vpop.eup %1912 }
 0x299   : > { %v1293_v37 = vmul.f32 %v1913_v52, %v1291_v10  ;;  %vm1298_vm15 = vweird.f32 %v1913_v52 }
 0x29a   : > { %vm1299_vm10 = vmor %vm1297_vm14, %vm1298_vm15 }
 0x29b   : > { %v1294_v50 = vsub.f32 1.0, %v1293_v37 }
 0x29d   : > { %v1295_v16 = vmul.f32 %v1913_v52, %v1294_v50 }
 0x29f   : > { %v1296_v25 = vadd.f32 %v1913_v52, %v1295_v16 }
 0x2a1   : > { %v1300_v53 = vsel %vm1299_vm10, %v1913_v52, %v1296_v25  ;;  %vm1336_vm10 = vcmask 126016  }
 0x2a2   : > { %v1305_v11 = vsel %vm1302_vm11, %v1304_v45, %v1300_v53  ;;  %v2639_v53 = vld [vmem:[#allocation10_spill] sm:$0xff] }
 0x2a3   : > { %v1306_v61 = vmul.f32 %v2462_v51, %v1305_v11  ;;  %v1566_v51 = vsub.f32 %v2448_v24, %v1565_v33  ;;  %v1039_v24 = vrot.slane %v1031_v22, 2  ;;  %v1033_v33 = vunpack.c.l.b16 %v2300_v27  ;;  %v2640_v11 = vld [vmem:[#allocation11_spill] sm:$0xff]  ;;  %v2645_v22 = vld [vmem:[#allocation17_spill] sm:$0xff] }
 0x2a4   : > { %v1048_v27 = vrot.slane %v1036_v0, 5  ;;  %v892_v34 = vunpack.c.l.b16 %v2639_v53  ;;  %v898_v12 = vunpack.c.l.b16 %v2645_v22 }
 0x2a5   : > { %1832 = vst.msk [vmem:[%s2484_s21 + $0x8] sm:$0xff] %vm1128_vm8, %v1306_v61  ;;  %v1309_v32 = vpack.c.bf16 %v1306_v61, %v1306_v61  ;;  %v1567_v3 = vmul.f32 1.442695, %v1566_v51  ;;  %v1040_v4 = vsel %vm550_vm0, %v1039_v24, %v1038_v55  ;;  %v893_v61 = vunpack.c.l.b16 %v2640_v11 }
 0x2a6   : > { %v1042_v17 = vsel %vm553_vm1, %v1041_v63, %v1040_v4  ;;  %v910_v13 = vrot.slane %v898_v12, 4 }
 0x2a7   : > { %1833 = vmatmul.msk.bf16.vlgmr.msra.gmra.mxu3 %vm1128_vm8, %v1309_v32  ;;  %1914 = vpow2.f32 %v1567_v3  ;;  %v1043_v38 = vsel %vm556_vm2, %v1033_v33, %v1042_v17  ;;  %v2641_v32 = vld [vmem:[#allocation12_spill] sm:$0xff]  ;;  %v901_v51 = vrot.slane %v893_v61, 1 }
 0x2a8   : > { %v1045_v8 = vsel %vm559_vm3, %v1044_v21, %v1043_v38 }
 0x2a9   : > { %v1047_v39 = vsel %vm562_vm4, %v1046_v2, %v1045_v8 }
 0x2aa   : > { %v1049_v6 = vsel %vm565_vm5, %v1048_v27, %v1047_v39 }
 0x2ab   : > { %v1051_v47 = vsel %vm568_vm6, %v1050_v9, %v1049_v6 }
 0x2ac   : > { %v1052_v62 = vpack.c.b16 %v1051_v47, %v1051_v47 }
 0x2ad   : > { %v1915_v18 = vpop.eup %1914 }
 0x2ae   : > { %v1569_v5 = vsel %vm1128_vm8, %v1915_v18, 0.0  ;;  %1055 = vst.msk [vmem:[#allocation3 + $0xc] sm:$0xf] %vm572_vm7, %v1052_v62 }
 0x2b5   : > { %v1591_v40 = vld [vmem:[#allocation3 + $0xc] sm:$0xf] }
 0x2b6   : > { %v1596_v14 = vsel %vm1178_vm9, %v1591_v40, 0 }
 0x2b7   : > { %1605 = vmatpush.bf16.msrb.mxu2 %v1596_v14 }
 0x2fd   : > { %v1191_v56 = vpop.f32.mrf.mxu1 }
 0x2fe   : > { %v1195_v19 = vpack.c.bf16 %v1191_v56, %v1191_v56  ;;  %v895_v56 = vunpack.c.l.b16 %v2641_v32 }
 0x300   : > { %1197 = vst.msk [vmem:[%s2522_s5] sm:$0xf] %vm572_vm7, %v1195_v19  ;;  %v900_v19 = vrot.slane %v892_v34, 2  ;;  %v904_v59 = vrot.slane %v895_v56, 7 }
 0x305   : > { %v1193_v57 = vpop.f32.mrf.mxu1 }
 0x306   : > { %v2642_v57 = vld [vmem:[#allocation13_spill] sm:$0xff] }
 0x307   : > { %v894_v3 = vunpack.c.l.b16 %v2642_v57 }
 0x30d   : > { %v1419_v7 = vpop.f32.mrf.mxu1 }
 0x30e   : > { %v1423_v54 = vsel %vm1128_vm8, %v1419_v7, -inf }
 0x30f   : > { %1424 = vmax.xlane.f32.xlu1 %v1423_v54 }
 0x315   : > { %v1421_v28 = vpop.f32.mrf.mxu1 }
 0x316   : > { %v902_v28 = vsel %vm550_vm0, %v901_v51, %v900_v19 }
 0x317   : > { %1570 = vadd.xlane.f32.xlu1 %v1569_v5  ;;  %v903_v55 = vsel %vm553_vm1, %v894_v3, %v902_v28 }
 0x318   : > { %v905_v63 = vsel %vm556_vm2, %v904_v59, %v903_v55 }
 0x32a   : > { %v1327_v46 = vpop.f32.mrf.mxu3 }
 0x32b   : > { %v1331_v1 = vpack.c.bf16 %v1327_v46, %v1327_v46  ;;  %v2646_v46 = vld [vmem:[#allocation16_spill] sm:$0xff] }
 0x32c   : > { %v899_v60 = vunpack.c.l.b16 %v2646_v46 }
 0x32d   : > { %1333 = vrot.lane.b32.xlu2 %v1331_v1, %s2623_s6 }
 0x32e   : > { %v912_v36 = vrot.slane %v899_v60, 3 }
 0x332   : > { %v1329_v10 = vpop.f32.mrf.mxu3 }
 0x382   : > { %v1425_v41 = vpop.xlane.xlu1 %1424 }
 0x383   : > { %v1426_v42 = vsub.f32 %v1419_v7, %v1425_v41  ;;  %v2643_v7 = vld [vmem:[#allocation14_spill] sm:$0xff] }
 0x384   : > { %v896_v54 = vunpack.c.l.b16 %v2643_v7 }
 0x385   : > { %v1427_v44 = vmul.f32 1.442695, %v1426_v42 }
 0x386   : > { %v906_v24 = vrot.slane %v896_v54, 6 }
 0x387   : > { %1916 = vpow2.f32 %v1427_v44  ;;  %v1334_v26 = vpop.permute.xlu2 %1333 }
 0x388   : > { %1337 = vst.msk [vmem:[%s2522_s5] sm:$0xf] %vm1336_vm10, %v1334_v26  ;;  %v907_v33 = vsel %vm559_vm3, %v906_v24, %v905_v63 }
 0x38a   : > { %v1571_v35 = vpop.xlane.xlu1 %1570 }
 0x38b   : > { %1918 = vrcp.f32 %v1571_v35  ;;  %v1583_v52 = vand.u32 2147483648, %v1571_v35  ;;  %v1581_v37 = vand.u32 2147483647, %v1571_v35  ;;  %vm1577_vm13 = vweird.f32 %v1571_v35 }
 0x38d   : > { %v2547_v48 = vpop.eup %1916  ;;  %v1584_v50 = vor.u32 1.1754944e-38, %v1583_v52  ;;  %vm1582_vm15 = vcmp.eq.f32.partialorder %v1581_v37, 8.507059e+37 }
 0x38e   : > { %v1429_v49 = vsel %vm1128_vm8, %v2547_v48, 0.0 }
 0x38f   : > { %1430 = vadd.xlane.f32.xlu0 %v1429_v49 }
 0x391   : > { %v1919_v15 = vpop.eup %1918 }
 0x392   : > { %v1573_v23 = vmul.f32 %v1919_v15, %v1571_v35  ;;  %vm1578_vm12 = vweird.f32 %v1919_v15 }
 0x393   : > { %vm1579_vm14 = vmor %vm1577_vm13, %vm1578_vm12 }
 0x394   : > { %v1574_v29 = vsub.f32 1.0, %v1573_v23 }
 0x396   : > { %v1575_v20 = vmul.f32 %v1919_v15, %v1574_v29 }
 0x398   : > { %v1576_v58 = vadd.f32 %v1919_v15, %v1575_v20 }
 0x39a   : > { %v1580_v43 = vsel %vm1579_vm14, %v1919_v15, %v1576_v58 }
 0x39b   : > { %v1585_v16 = vsel %vm1582_vm15, %v1584_v50, %v1580_v43 }
 0x39c   : > { %v1586_v45 = vmul.f32 %v1915_v18, %v1585_v16  ;;  %v2644_v18 = vld [vmem:[#allocation15_spill] sm:$0xff] }
 0x39d   : > { %v897_v5 = vunpack.c.l.b16 %v2644_v18 }
 0x39e   : > { %1838 = vst.msk [vmem:[%s2484_s21 + $0x18] sm:$0xff] %vm1128_vm8, %v1586_v45  ;;  %v1589_v25 = vpack.c.bf16 %v1586_v45, %v1586_v45 }
 0x39f   : > { %v908_v1 = vrot.slane %v897_v5, 5 }
 0x3a0   : > { %1839 = vmatmul.msk.bf16.vlgmr.msrb.gmra.mxu2 %vm1128_vm8, %v1589_v25 }
 0x3a1   : > { %v909_v4 = vsel %vm562_vm4, %v908_v1, %v907_v33 }
 0x3a2   : > { %v911_v0 = vsel %vm565_vm5, %v910_v13, %v909_v4 }
 0x3a3   : > { %v913_v17 = vsel %vm568_vm6, %v912_v36, %v911_v0 }
 0x3a4   : > { %v914_v21 = vpack.c.b16 %v913_v17, %v913_v17 }
 0x3a6   : > { %917 = vst.msk [vmem:[#allocation3 + $0x8] sm:$0xf] %vm572_vm7, %v914_v21 }
 0x3ad   : > { %v1451_v31 = vld [vmem:[#allocation3 + $0x8] sm:$0xf] }
 0x3ae   : > { %v1456_v30 = vsel %vm1178_vm9, %v1451_v31, 0 }
 0x3af   : > { %1465 = vmatpush.bf16.msrb.mxu3 %v1456_v30 }
 0x402   : > { %v1431_v38 = vpop.xlane.xlu0 %1430 }
 0x403   : > { %1920 = vrcp.f32 %v1431_v38  ;;  %v1443_v39 = vand.u32 2147483648, %v1431_v38  ;;  %v1441_v6 = vand.u32 2147483647, %v1431_v38  ;;  %vm1437_vm1 = vweird.f32 %v1431_v38 }
 0x405   : > { %v1444_v10 = vor.u32 1.1754944e-38, %v1443_v39  ;;  %vm1442_vm3 = vcmp.eq.f32.partialorder %v1441_v6, 8.507059e+37 }
 0x409   : > { %v1921_v2 = vpop.eup %1920 }
 0x40a   : > { %v1433_v8 = vmul.f32 %v1921_v2, %v1431_v38  ;;  %vm1438_vm0 = vweird.f32 %v1921_v2 }
 0x40b   : > { %vm1439_vm2 = vmor %vm1437_vm1, %vm1438_vm0 }
 0x40c   : > { %v1434_v27 = vsub.f32 1.0, %v1433_v8 }
 0x40e   : > { %v1435_v9 = vmul.f32 %v1921_v2, %v1434_v27 }
 0x410   : > { %v1436_v47 = vadd.f32 %v1921_v2, %v1435_v9 }
 0x412   : > { %v1440_v62 = vsel %vm1439_vm2, %v1921_v2, %v1436_v47 }
 0x413   : > { %v1445_v40 = vsel %vm1442_vm3, %v1444_v10, %v1440_v62 }
 0x414   : > { %v1446_v14 = vmul.f32 %v2547_v48, %v1445_v40 }
 0x416   : > { %1835 = vst.msk [vmem:[%s2484_s21 + $0x10] sm:$0xff] %vm1128_vm8, %v1446_v14  ;;  %v1449_v41 = vpack.c.bf16 %v1446_v14, %v1446_v14 }
 0x418   : > { %1836 = vmatmul.msk.bf16.vlgmr.msrb.gmra.mxu3 %vm1128_vm8, %v1449_v41 }
 0x423   : > { %v1607_v42 = vpop.f32.mrf.mxu2 }
 0x424   : > { %v1611_v44 = vpack.c.bf16 %v1607_v42, %v1607_v42 }
 0x426   : > { %1613 = vrot.lane.b32.xlu1 %v1611_v44, %s2003_s7 }
 0x42b   : > { %v1609_v35 = vpop.f32.mrf.mxu2 }
 0x42c   : > { %1949 = shalt.err (!%p1946_p8)
}
 0x42d   : > { %s2004_s25 = smov 128   ;;  %s2647_s21 = smov 8   ;;  %vm1476_vm4 = vcmask 191616   ;;  %vm1616_vm5 = vcmask 257216  }
 0x42e   : > { %1847 = dma.vmem_to_hbm [thread:$0]  (%p2074_p5), %s1643_s12, 512, %s1645_s13, %s1626_s14, %s2004_s25, %s2004_s25, %s2647_s21  }
 0x42f   : > { %s2005_s8 = smov 16  }
 0x498   : > { %v1614_v29 = vpop.permute.xlu1 %1613 }
 0x49b   : > { %v1467_v48 = vpop.f32.mrf.mxu3 }
 0x49c   : > { %v1471_v49 = vpack.c.bf16 %v1467_v48, %v1467_v48 }
 0x49e   : > { %1473 = vrot.lane.b32.xlu0 %v1471_v49, %s2005_s8 }
 0x4a3   : > { %v1469_v15 = vpop.f32.mrf.mxu3 }
 0x510   : > { %v1474_v23 = vpop.permute.xlu0 %1473 }
 0x511   : > { %1477 = vst.msk [vmem:[%s2522_s5] sm:$0xf] %vm1476_vm4, %v1474_v23 }
 0x512   : > { %1617 = vst.msk [vmem:[%s2522_s5] sm:$0xf] %vm1616_vm5, %v1614_v29 }
 0x513 PF: > { %s1669_s26 = sand.u32 1, %s1980_s15   ;;  %p1850_p11 = pnand %p1800_p10, %p2085_p9 }
 0x514   : > { %s1670_s6 = scalar_lea.sflag [#allocation8], %s1669_s26 }
 0x515   : > { %p1851_p5 = pneg %p1850_p11 }
 0x517   : > { %1975 = dma.done.wait (%p1851_p5), %s1670_s6, 512  }
 0x518   : > { %1977 = vsyncadd (%p1851_p5), %s1670_s6, 4294966784  ;;  %s18_s20 = sadd.s32 1, %s2000_s20   ;;  %s2648_s15 = smov %s1984_s16 }
 0x519   : > { %p15_p12 = scmp.ge.s32.totalorder %s18_s20, 4   ;;  %s2649_s16 = smov %s1988_s17 }
 0x51a   : > { %s2650_s17 = smov %s2083_s28  ;;  %s2651_s18 = smov %s1996_s19 }
 0x51b   : > { %s2652_s19 = smov %s2654_s23  ;;  %17 = sbr.rel (!%p15_p12) target bundleno = 4 (0x4), region = 270 }
 0x520   :  { %1676 = vsyncpa [#allocation8], 1 }
 0x521   :  { %1678 = vsyncpa [#allocation8 + $0x1], 1 }

</bundles_post_ra>
